<compile_context>
chip_gen: v6e
topology: v6e:2x2x1
jax: 0.10.0
libtpu: 0.0.40
codegen_flags: <defaults>
</compile_context>

<pallas_src>
import functools

import jax
import jax.numpy as jnp
import numpy as np
from jax.experimental import pallas as pl
from jax.experimental.pallas import tpu as pltpu

HIDDEN = 64      # fixed by the module (self.hidden_space = 64)
SUBLANE = 8      # TPU sublane tile; batch rows padded to a multiple of this
OUT_LANES = 128  # lane-dense output width for the action head


# ----------------------------------------------------------------------------
# Kernel
# ----------------------------------------------------------------------------
def actor_kernel(x_ref, h0_ref, c0_ref,
                 w1_ref, b1_ref,
                 wih_ref, whh_ref, bl_ref,
                 w2_ref, b2_ref,
                 act_ref, hc_ref,
                 pre_sc, hs_sc,
                 *, seq_len, batch, hidden, max_action):
    T, B, H = seq_len, batch, hidden

    # --- Phase 1 (time-parallel, hoisted): Linear1 + ReLU and the LSTM input
    # projection for ALL timesteps as two matmuls (bf16 operands, f32 accum),
    # staged into VMEM scratch.  Row index = t*B + b (time-major).
    z = jnp.dot(x_ref[...].astype(jnp.bfloat16), w1_ref[...],
                preferred_element_type=jnp.float32) + b1_ref[...]
    z = jnp.maximum(z, 0.0)                                            # (T*B, H) f32
    pre_sc[...] = jnp.dot(z.astype(jnp.bfloat16), wih_ref[...],
                          preferred_element_type=jnp.float32) + bl_ref[...]

    # --- Phase 2 (sequential): per step only h @ W_hh (f32 MXU) plus the gate
    # elementwise math.  Gate column order is [f, i, o, g] (permuted in the
    # wrapper), so sigmoid covers one contiguous 3H slice and the f*c / o*tanh(c)
    # products sit at lane offset 0 of their vregs.
    def step(t, carry):
        h, c = carry
        row = pl.multiple_of(t * B, SUBLANE)
        g_all = pre_sc[pl.ds(row, B), :] + jnp.dot(
            h, whh_ref[...], preferred_element_type=jnp.float32)      # (B, 4H)
        # sigmoid(x) = 0.5*tanh(0.5*x) + 0.5 : one EUP pass over 3H lanes.
        s = 0.5 * jnp.tanh(0.5 * g_all[:, :3 * H]) + 0.5
        g_g = jnp.tanh(g_all[:, 3 * H:])                               # g-gate only
        f_g = s[:, 0 * H:1 * H]
        i_g = s[:, 1 * H:2 * H]
        o_g = s[:, 2 * H:3 * H]
        c = f_g * c + i_g * g_g
        h = o_g * jnp.tanh(c)
        hs_sc[pl.ds(row, B), :] = h        # tile-aligned (B multiple of 8)
        return h, c

    h, c = jax.lax.fori_loop(0, T, step, (h0_ref[...], c0_ref[...]), unroll=True)

    # --- Phase 3 (time-parallel, hoisted): Linear2 + max_action*tanh over all
    # timesteps, written back as one lane-dense (128-column) block.
    y = jnp.dot(hs_sc[...].astype(jnp.bfloat16), w2_ref[...],
                preferred_element_type=jnp.float32) + b2_ref[...]      # (T*B, 128)
    act_ref[...] = (max_action * jnp.tanh(y)).astype(act_ref.dtype)
    hc_ref[...] = jnp.concatenate([h, c], axis=-1).astype(hc_ref.dtype)


# ----------------------------------------------------------------------------
# One-time (outside jit) parameter preparation for the kernel
# ----------------------------------------------------------------------------
def prepare_params(params):
    """Gate-column permutation [i,f,g,o] -> [f,i,o,g], bf16 cast of the
    time-parallel matmul weights, and lane-dense (128-col) padding of the
    output head.  Done once; the kernel consumes the result directly."""
    H = HIDDEN

    def permute_gates(w):   # last axis is 4H in PyTorch order i, f, g, o
        i, f, g, o = (w[..., 0 * H:1 * H], w[..., 1 * H:2 * H],
                      w[..., 2 * H:3 * H], w[..., 3 * H:4 * H])
        return jnp.concatenate([f, i, o, g], axis=-1)

    A = params["w2"].shape[1]
    w2p = jnp.zeros((H, OUT_LANES), jnp.float32).at[:, :A].set(params["w2"])
    b2p = jnp.zeros((1, OUT_LANES), jnp.float32).at[:, :A].set(params["b2"])
    return dict(
        w1=params["w1"].astype(jnp.bfloat16),
        b1=params["b1"],
        wih=permute_gates(params["wih"]).astype(jnp.bfloat16),
        whh=permute_gates(params["whh"]),          # stays f32 (recurrent path)
        bl=permute_gates(params["bl"]),
        w2=w2p.astype(jnp.bfloat16),
        b2=b2p,
    )


# ----------------------------------------------------------------------------
# Wrapper
# ----------------------------------------------------------------------------
@functools.partial(jax.jit, static_argnames=("action_dim", "max_action"))
def actor_forward(state, h0, c0, kparams, *, action_dim, max_action):
    """state: (B, T, S); h0, c0: (1, B, H).  Returns (action (B,T,A), h, c)."""
    B, T, S = state.shape
    H = HIDDEN
    BP = ((B + SUBLANE - 1) // SUBLANE) * SUBLANE   # batch padded to sublane tile

    # Time-major, batch-padded layout; kernel row index = t*BP + b.
    x_tm = jnp.pad(jnp.swapaxes(state, 0, 1),
                   ((0, 0), (0, BP - B), (0, 0))).reshape(T * BP, S)
    h0_p = jnp.pad(h0[0], ((0, BP - B), (0, 0)))
    c0_p = jnp.pad(c0[0], ((0, BP - B), (0, 0)))

    kernel = functools.partial(actor_kernel, seq_len=T, batch=BP, hidden=H,
                               max_action=float(max_action))

    # Grid-free single invocation: every operand is a whole-array VMEM block,
    # weights resident exactly once, recurrence is an in-kernel unrolled loop.
    act_flat, hc = pl.pallas_call(
        kernel,
        out_shape=(jax.ShapeDtypeStruct((T * BP, OUT_LANES), jnp.float32),  # action
                   jax.ShapeDtypeStruct((BP, 2 * H), jnp.float32)),         # [h | c]
        scratch_shapes=[pltpu.VMEM((T * BP, 4 * H), jnp.float32),   # gate pre-acts
                        pltpu.VMEM((T * BP, H), jnp.float32)],      # collected h_t
    )(x_tm, h0_p, c0_p,
      kparams["w1"], kparams["b1"],
      kparams["wih"], kparams["whh"], kparams["bl"],
      kparams["w2"], kparams["b2"])

    action = jnp.swapaxes(
        act_flat[:, :action_dim].reshape(T, BP, action_dim), 0, 1)[:B]   # (B, T, A)
    new_h = hc[:B, :H][None]                                             # (1, B, H)
    new_c = hc[:B, H:][None]
    return action, new_h, new_c


# ----------------------------------------------------------------------------
# Pure-JAX f32 reference (mirrors the PyTorch module exactly)
# ----------------------------------------------------------------------------
def actor_ref(state, h0, c0, params, max_action):
    H = HIDDEN
    hi = jax.lax.Precision.HIGHEST
    z = jnp.maximum(
        jnp.einsum("bts,sh->bth", state, params["w1"],
                   preferred_element_type=jnp.float32, precision=hi)
        + params["b1"][0], 0.0)

    def step(carry, x_t):
        h, c = carry
        gates = (jnp.dot(x_t, params["wih"],
                         preferred_element_type=jnp.float32, precision=hi)
                 + jnp.dot(h, params["whh"],
                           preferred_element_type=jnp.float32, precision=hi)
                 + params["bl"][0])
        i_g = jax.nn.sigmoid(gates[:, 0 * H:1 * H])     # PyTorch order: i, f, g, o
        f_g = jax.nn.sigmoid(gates[:, 1 * H:2 * H])
        g_g = jnp.tanh(gates[:, 2 * H:3 * H])
        o_g = jax.nn.sigmoid(gates[:, 3 * H:4 * H])
        c_new = f_g * c + i_g * g_g
        h_new = o_g * jnp.tanh(c_new)
        return (h_new, c_new), h_new

    (hT, cT), hs = jax.lax.scan(step, (h0[0], c0[0]), jnp.transpose(z, (1, 0, 2)))
    hs = jnp.transpose(hs, (1, 0, 2))                                   # (B, T, H)
    y = jnp.einsum("bth,ha->bta", hs, params["w2"],
                   preferred_element_type=jnp.float32, precision=hi) + params["b2"][0]
    return max_action * jnp.tanh(y), hT[None], cT[None]


# ----------------------------------------------------------------------------
# Deterministic parameter init (PyTorch-default-style uniform, synthetic)
# ----------------------------------------------------------------------------
def init_params(key, state_dim, action_dim):
    H = HIDDEN
    ks = jax.random.split(key, 8)

    def uni(k, shape, fan_in):
        bound = 1.0 / np.sqrt(fan_in)
        return jax.random.uniform(k, shape, jnp.float32, -bound, bound)

    # Stored pre-transposed to (in, out) for row-major matmuls; PyTorch gate
    # order (i, f, g, o); bl = b_ih + b_hh folded.
    w1 = uni(ks[0], (state_dim, H), state_dim)
    b1 = uni(ks[1], (1, H), state_dim)
    wih = uni(ks[2], (H, 4 * H), H)
    whh = uni(ks[3], (H, 4 * H), H)
    bl = uni(ks[4], (1, 4 * H), H) + uni(ks[5], (1, 4 * H), H)
    w2 = uni(ks[6], (H, action_dim), H)
    b2 = uni(ks[7], (1, action_dim), H)
    return dict(w1=w1, b1=b1, wih=wih, whh=whh, bl=bl, w2=w2, b2=b2)


if __name__ == "__main__":
    B, T = 2, 8
    state_dim, action_dim, max_action = 12, 3, 2.0

    key = jax.random.PRNGKey(0)
    k_par, k_x = jax.random.split(key)
    params = init_params(k_par, state_dim, action_dim)
    kparams = prepare_params(params)          # permuted / padded / bf16, once

    state = jax.random.normal(k_x, (B, T, state_dim), jnp.float32)
    h0 = jnp.zeros((1, B, HIDDEN), jnp.float32)   # init_hidden_state(training=True)
    c0 = jnp.zeros((1, B, HIDDEN), jnp.float32)

    action, new_h, new_c = actor_forward(state, h0, c0, kparams,
                                         action_dim=action_dim,
                                         max_action=max_action)
    jax.block_until_ready((action, new_h, new_c))

    # Check against the exact f32 reference.  Tolerance reflects the bf16 MXU
    # operands used for the Phase-1/3 matmuls (eps ~ 4e-3) propagated through
    # the T=8 recurrence; the recurrent h@W_hh itself stays f32.  Observed
    # errors are O(1e-2) or below; a gate/permutation bug would be O(0.1-1).
    a_ref, h_ref, c_ref = actor_ref(state, h0, c0, params, max_action)
    np.testing.assert_allclose(np.asarray(action), np.asarray(a_ref),
                               rtol=5e-2, atol=5e-2)
    np.testing.assert_allclose(np.asarray(new_h), np.asarray(h_ref),
                               rtol=5e-2, atol=5e-2)
    np.testing.assert_allclose(np.asarray(new_c), np.asarray(c_ref),
                               rtol=5e-2, atol=5e-2)

    print("KERNEL_OK")
</pallas_src>

<mosaic_0001>
module attributes {stable_mosaic.version = 11 : i64} {
  func.func @actor_kernel(%arg0: memref<64x12xf32, #tpu.memory_space<vmem>>, %arg1: memref<8x64xf32, #tpu.memory_space<vmem>>, %arg2: memref<8x64xf32, #tpu.memory_space<vmem>>, %arg3: memref<12x64xbf16, #tpu.memory_space<vmem>>, %arg4: memref<1x64xf32, #tpu.memory_space<vmem>>, %arg5: memref<64x256xbf16, #tpu.memory_space<vmem>>, %arg6: memref<64x256xf32, #tpu.memory_space<vmem>>, %arg7: memref<1x256xf32, #tpu.memory_space<vmem>>, %arg8: memref<64x128xbf16, #tpu.memory_space<vmem>>, %arg9: memref<1x128xf32, #tpu.memory_space<vmem>>, %arg10: memref<64x128xf32, #tpu.memory_space<vmem>>, %arg11: memref<8x128xf32, #tpu.memory_space<vmem>>, %arg12: memref<64x256xf32, #tpu.memory_space<vmem>>, %arg13: memref<64x64xf32, #tpu.memory_space<vmem>>) attributes {dimension_semantics = [], scalar_prefetch = 0 : i64, scratch_operands = 2 : i64, tpu.core_type = #tpu.core_type<tc>} {
    %c0 = arith.constant 0 : index
    %c0_0 = arith.constant 0 : index
    %0 = vector.load %arg0[%c0, %c0_0] : memref<64x12xf32, #tpu.memory_space<vmem>>, vector<64x12xf32>
    %1 = arith.truncf %0 : vector<64x12xf32> to vector<64x12xbf16>
    %c0_1 = arith.constant 0 : index
    %c0_2 = arith.constant 0 : index
    %2 = vector.load %arg3[%c0_1, %c0_2] : memref<12x64xbf16, #tpu.memory_space<vmem>>, vector<12x64xbf16>
    %cst = arith.constant dense<0.000000e+00> : vector<64x64xf32>
    %3 = tpu.matmul %1, %2, %cst {dimension_numbers = #tpu.dot_dimension_numbers<[1], [0], [0], [1], [0, 0, 1, 1], [], []>} : vector<64x12xbf16>, vector<12x64xbf16>, vector<64x64xf32> -> vector<64x64xf32>
    %c0_3 = arith.constant 0 : index
    %c0_4 = arith.constant 0 : index
    %4 = vector.load %arg4[%c0_3, %c0_4] : memref<1x64xf32, #tpu.memory_space<vmem>>, vector<1x64xf32>
    %5 = vector.broadcast %4 : vector<1x64xf32> to vector<64x64xf32>
    %6 = arith.addf %3, %5 : vector<64x64xf32>
    %cst_5 = arith.constant 0.000000e+00 : f32
    %7 = vector.broadcast %cst_5 : f32 to vector<64x64xf32>
    %8 = arith.maximumf %6, %7 : vector<64x64xf32>
    %9 = arith.truncf %8 : vector<64x64xf32> to vector<64x64xbf16>
    %c0_6 = arith.constant 0 : index
    %c0_7 = arith.constant 0 : index
    %10 = vector.load %arg5[%c0_6, %c0_7] : memref<64x256xbf16, #tpu.memory_space<vmem>>, vector<64x256xbf16>
    %cst_8 = arith.constant dense<0.000000e+00> : vector<64x256xf32>
    %11 = tpu.matmul %9, %10, %cst_8 {dimension_numbers = #tpu.dot_dimension_numbers<[1], [0], [0], [1], [0, 0, 1, 1], [], []>} : vector<64x64xbf16>, vector<64x256xbf16>, vector<64x256xf32> -> vector<64x256xf32>
    %c0_9 = arith.constant 0 : index
    %c0_10 = arith.constant 0 : index
    %12 = vector.load %arg7[%c0_9, %c0_10] : memref<1x256xf32, #tpu.memory_space<vmem>>, vector<1x256xf32>
    %13 = vector.broadcast %12 : vector<1x256xf32> to vector<64x256xf32>
    %14 = arith.addf %11, %13 : vector<64x256xf32>
    %c0_11 = arith.constant 0 : index
    %c0_12 = arith.constant 0 : index
    %15 = vector.load %arg12[%c0_11, %c0_12] : memref<64x256xf32, #tpu.memory_space<vmem>>, vector<64x256xf32>
    tpu.vector_store %arg12[%c0_11, %c0_12], %14 {strides = array<i32>} : memref<64x256xf32, #tpu.memory_space<vmem>>, vector<64x256xf32>,
    %c0_13 = arith.constant 0 : index
    %c0_14 = arith.constant 0 : index
    %16 = vector.load %arg1[%c0_13, %c0_14] : memref<8x64xf32, #tpu.memory_space<vmem>>, vector<8x64xf32>
    %c0_15 = arith.constant 0 : index
    %c0_16 = arith.constant 0 : index
    %17 = vector.load %arg2[%c0_15, %c0_16] : memref<8x64xf32, #tpu.memory_space<vmem>>, vector<8x64xf32>
    %c0_i32 = arith.constant 0 : i32
    %c8_i32 = arith.constant 8 : i32
    %18 = arith.muli %c0_i32, %c8_i32 : i32
    %19 = tpu.assume_multiple %18, 8 : i32
    %20 = arith.index_cast %19 : i32 to index
    %c0_17 = arith.constant 0 : index
    %21 = vector.load %arg12[%20, %c0_17] : memref<64x256xf32, #tpu.memory_space<vmem>>, vector<8x256xf32>
    %c0_18 = arith.constant 0 : index
    %c0_19 = arith.constant 0 : index
    %22 = vector.load %arg6[%c0_18, %c0_19] : memref<64x256xf32, #tpu.memory_space<vmem>>, vector<64x256xf32>
    %cst_20 = arith.constant dense<0.000000e+00> : vector<8x256xf32>
    %23 = tpu.matmul %16, %22, %cst_20 {dimension_numbers = #tpu.dot_dimension_numbers<[1], [0], [0], [1], [0, 0, 1, 1], [], []>} : vector<8x64xf32>, vector<64x256xf32>, vector<8x256xf32> -> vector<8x256xf32>
    %24 = arith.addf %21, %23 : vector<8x256xf32>
    %25 = vector.extract_strided_slice %24 {offsets = [0, 0], sizes = [8, 192], strides = [1, 1]} : vector<8x256xf32> to vector<8x192xf32>
    %cst_21 = arith.constant 5.000000e-01 : f32
    %26 = vector.broadcast %cst_21 : f32 to vector<8x192xf32>
    %27 = arith.mulf %26, %25 : vector<8x192xf32>
    %28 = math.tanh %27 : vector<8x192xf32>
    %cst_22 = arith.constant 5.000000e-01 : f32
    %29 = vector.broadcast %cst_22 : f32 to vector<8x192xf32>
    %30 = arith.mulf %29, %28 : vector<8x192xf32>
    %cst_23 = arith.constant 5.000000e-01 : f32
    %31 = vector.broadcast %cst_23 : f32 to vector<8x192xf32>
    %32 = arith.addf %30, %31 : vector<8x192xf32>
    %33 = vector.extract_strided_slice %24 {offsets = [0, 192], sizes = [8, 64], strides = [1, 1]} : vector<8x256xf32> to vector<8x64xf32>
    %34 = math.tanh %33 : vector<8x64xf32>
    %35 = vector.extract_strided_slice %32 {offsets = [0, 0], sizes = [8, 64], strides = [1, 1]} : vector<8x192xf32> to vector<8x64xf32>
    %36 = vector.extract_strided_slice %32 {offsets = [0, 64], sizes = [8, 64], strides = [1, 1]} : vector<8x192xf32> to vector<8x64xf32>
    %37 = vector.extract_strided_slice %32 {offsets = [0, 128], sizes = [8, 64], strides = [1, 1]} : vector<8x192xf32> to vector<8x64xf32>
    %38 = arith.mulf %35, %17 : vector<8x64xf32>
    %39 = arith.mulf %36, %34 : vector<8x64xf32>
    %40 = arith.addf %38, %39 : vector<8x64xf32>
    %41 = math.tanh %40 : vector<8x64xf32>
    %42 = arith.mulf %37, %41 : vector<8x64xf32>
    %43 = arith.index_cast %19 : i32 to index
    %c0_24 = arith.constant 0 : index
    %44 = vector.load %arg13[%43, %c0_24] : memref<64x64xf32, #tpu.memory_space<vmem>>, vector<8x64xf32>
    tpu.vector_store %arg13[%43, %c0_24], %42 {strides = array<i32>} : memref<64x64xf32, #tpu.memory_space<vmem>>, vector<8x64xf32>,
    %c1_i32 = arith.constant 1 : i32
    %c8_i32_25 = arith.constant 8 : i32
    %45 = arith.muli %c1_i32, %c8_i32_25 : i32
    %46 = tpu.assume_multiple %45, 8 : i32
    %47 = arith.index_cast %46 : i32 to index
    %c0_26 = arith.constant 0 : index
    %48 = vector.load %arg12[%47, %c0_26] : memref<64x256xf32, #tpu.memory_space<vmem>>, vector<8x256xf32>
    %c0_27 = arith.constant 0 : index
    %c0_28 = arith.constant 0 : index
    %49 = vector.load %arg6[%c0_27, %c0_28] : memref<64x256xf32, #tpu.memory_space<vmem>>, vector<64x256xf32>
    %cst_29 = arith.constant dense<0.000000e+00> : vector<8x256xf32>
    %50 = tpu.matmul %42, %49, %cst_29 {dimension_numbers = #tpu.dot_dimension_numbers<[1], [0], [0], [1], [0, 0, 1, 1], [], []>} : vector<8x64xf32>, vector<64x256xf32>, vector<8x256xf32> -> vector<8x256xf32>
    %51 = arith.addf %48, %50 : vector<8x256xf32>
    %52 = vector.extract_strided_slice %51 {offsets = [0, 0], sizes = [8, 192], strides = [1, 1]} : vector<8x256xf32> to vector<8x192xf32>
    %cst_30 = arith.constant 5.000000e-01 : f32
    %53 = vector.broadcast %cst_30 : f32 to vector<8x192xf32>
    %54 = arith.mulf %53, %52 : vector<8x192xf32>
    %55 = math.tanh %54 : vector<8x192xf32>
    %cst_31 = arith.constant 5.000000e-01 : f32
    %56 = vector.broadcast %cst_31 : f32 to vector<8x192xf32>
    %57 = arith.mulf %56, %55 : vector<8x192xf32>
    %cst_32 = arith.constant 5.000000e-01 : f32
    %58 = vector.broadcast %cst_32 : f32 to vector<8x192xf32>
    %59 = arith.addf %57, %58 : vector<8x192xf32>
    %60 = vector.extract_strided_slice %51 {offsets = [0, 192], sizes = [8, 64], strides = [1, 1]} : vector<8x256xf32> to vector<8x64xf32>
    %61 = math.tanh %60 : vector<8x64xf32>
    %62 = vector.extract_strided_slice %59 {offsets = [0, 0], sizes = [8, 64], strides = [1, 1]} : vector<8x192xf32> to vector<8x64xf32>
    %63 = vector.extract_strided_slice %59 {offsets = [0, 64], sizes = [8, 64], strides = [1, 1]} : vector<8x192xf32> to vector<8x64xf32>
    %64 = vector.extract_strided_slice %59 {offsets = [0, 128], sizes = [8, 64], strides = [1, 1]} : vector<8x192xf32> to vector<8x64xf32>
    %65 = arith.mulf %62, %40 : vector<8x64xf32>
    %66 = arith.mulf %63, %61 : vector<8x64xf32>
    %67 = arith.addf %65, %66 : vector<8x64xf32>
    %68 = math.tanh %67 : vector<8x64xf32>
    %69 = arith.mulf %64, %68 : vector<8x64xf32>
    %70 = arith.index_cast %46 : i32 to index
    %c0_33 = arith.constant 0 : index
    %71 = vector.load %arg13[%70, %c0_33] : memref<64x64xf32, #tpu.memory_space<vmem>>, vector<8x64xf32>
    tpu.vector_store %arg13[%70, %c0_33], %69 {strides = array<i32>} : memref<64x64xf32, #tpu.memory_space<vmem>>, vector<8x64xf32>,
    %c2_i32 = arith.constant 2 : i32
    %c8_i32_34 = arith.constant 8 : i32
    %72 = arith.muli %c2_i32, %c8_i32_34 : i32
    %73 = tpu.assume_multiple %72, 8 : i32
    %74 = arith.index_cast %73 : i32 to index
    %c0_35 = arith.constant 0 : index
    %75 = vector.load %arg12[%74, %c0_35] : memref<64x256xf32, #tpu.memory_space<vmem>>, vector<8x256xf32>
    %c0_36 = arith.constant 0 : index
    %c0_37 = arith.constant 0 : index
    %76 = vector.load %arg6[%c0_36, %c0_37] : memref<64x256xf32, #tpu.memory_space<vmem>>, vector<64x256xf32>
    %cst_38 = arith.constant dense<0.000000e+00> : vector<8x256xf32>
    %77 = tpu.matmul %69, %76, %cst_38 {dimension_numbers = #tpu.dot_dimension_numbers<[1], [0], [0], [1], [0, 0, 1, 1], [], []>} : vector<8x64xf32>, vector<64x256xf32>, vector<8x256xf32> -> vector<8x256xf32>
    %78 = arith.addf %75, %77 : vector<8x256xf32>
    %79 = vector.extract_strided_slice %78 {offsets = [0, 0], sizes = [8, 192], strides = [1, 1]} : vector<8x256xf32> to vector<8x192xf32>
    %cst_39 = arith.constant 5.000000e-01 : f32
    %80 = vector.broadcast %cst_39 : f32 to vector<8x192xf32>
    %81 = arith.mulf %80, %79 : vector<8x192xf32>
    %82 = math.tanh %81 : vector<8x192xf32>
    %cst_40 = arith.constant 5.000000e-01 : f32
    %83 = vector.broadcast %cst_40 : f32 to vector<8x192xf32>
    %84 = arith.mulf %83, %82 : vector<8x192xf32>
    %cst_41 = arith.constant 5.000000e-01 : f32
    %85 = vector.broadcast %cst_41 : f32 to vector<8x192xf32>
    %86 = arith.addf %84, %85 : vector<8x192xf32>
    %87 = vector.extract_strided_slice %78 {offsets = [0, 192], sizes = [8, 64], strides = [1, 1]} : vector<8x256xf32> to vector<8x64xf32>
    %88 = math.tanh %87 : vector<8x64xf32>
    %89 = vector.extract_strided_slice %86 {offsets = [0, 0], sizes = [8, 64], strides = [1, 1]} : vector<8x192xf32> to vector<8x64xf32>
    %90 = vector.extract_strided_slice %86 {offsets = [0, 64], sizes = [8, 64], strides = [1, 1]} : vector<8x192xf32> to vector<8x64xf32>
    %91 = vector.extract_strided_slice %86 {offsets = [0, 128], sizes = [8, 64], strides = [1, 1]} : vector<8x192xf32> to vector<8x64xf32>
    %92 = arith.mulf %89, %67 : vector<8x64xf32>
    %93 = arith.mulf %90, %88 : vector<8x64xf32>
    %94 = arith.addf %92, %93 : vector<8x64xf32>
    %95 = math.tanh %94 : vector<8x64xf32>
    %96 = arith.mulf %91, %95 : vector<8x64xf32>
    %97 = arith.index_cast %73 : i32 to index
    %c0_42 = arith.constant 0 : index
    %98 = vector.load %arg13[%97, %c0_42] : memref<64x64xf32, #tpu.memory_space<vmem>>, vector<8x64xf32>
    tpu.vector_store %arg13[%97, %c0_42], %96 {strides = array<i32>} : memref<64x64xf32, #tpu.memory_space<vmem>>, vector<8x64xf32>,
    %c3_i32 = arith.constant 3 : i32
    %c8_i32_43 = arith.constant 8 : i32
    %99 = arith.muli %c3_i32, %c8_i32_43 : i32
    %100 = tpu.assume_multiple %99, 8 : i32
    %101 = arith.index_cast %100 : i32 to index
    %c0_44 = arith.constant 0 : index
    %102 = vector.load %arg12[%101, %c0_44] : memref<64x256xf32, #tpu.memory_space<vmem>>, vector<8x256xf32>
    %c0_45 = arith.constant 0 : index
    %c0_46 = arith.constant 0 : index
    %103 = vector.load %arg6[%c0_45, %c0_46] : memref<64x256xf32, #tpu.memory_space<vmem>>, vector<64x256xf32>
    %cst_47 = arith.constant dense<0.000000e+00> : vector<8x256xf32>
    %104 = tpu.matmul %96, %103, %cst_47 {dimension_numbers = #tpu.dot_dimension_numbers<[1], [0], [0], [1], [0, 0, 1, 1], [], []>} : vector<8x64xf32>, vector<64x256xf32>, vector<8x256xf32> -> vector<8x256xf32>
    %105 = arith.addf %102, %104 : vector<8x256xf32>
    %106 = vector.extract_strided_slice %105 {offsets = [0, 0], sizes = [8, 192], strides = [1, 1]} : vector<8x256xf32> to vector<8x192xf32>
    %cst_48 = arith.constant 5.000000e-01 : f32
    %107 = vector.broadcast %cst_48 : f32 to vector<8x192xf32>
    %108 = arith.mulf %107, %106 : vector<8x192xf32>
    %109 = math.tanh %108 : vector<8x192xf32>
    %cst_49 = arith.constant 5.000000e-01 : f32
    %110 = vector.broadcast %cst_49 : f32 to vector<8x192xf32>
    %111 = arith.mulf %110, %109 : vector<8x192xf32>
    %cst_50 = arith.constant 5.000000e-01 : f32
    %112 = vector.broadcast %cst_50 : f32 to vector<8x192xf32>
    %113 = arith.addf %111, %112 : vector<8x192xf32>
    %114 = vector.extract_strided_slice %105 {offsets = [0, 192], sizes = [8, 64], strides = [1, 1]} : vector<8x256xf32> to vector<8x64xf32>
    %115 = math.tanh %114 : vector<8x64xf32>
    %116 = vector.extract_strided_slice %113 {offsets = [0, 0], sizes = [8, 64], strides = [1, 1]} : vector<8x192xf32> to vector<8x64xf32>
    %117 = vector.extract_strided_slice %113 {offsets = [0, 64], sizes = [8, 64], strides = [1, 1]} : vector<8x192xf32> to vector<8x64xf32>
    %118 = vector.extract_strided_slice %113 {offsets = [0, 128], sizes = [8, 64], strides = [1, 1]} : vector<8x192xf32> to vector<8x64xf32>
    %119 = arith.mulf %116, %94 : vector<8x64xf32>
    %120 = arith.mulf %117, %115 : vector<8x64xf32>
    %121 = arith.addf %119, %120 : vector<8x64xf32>
    %122 = math.tanh %121 : vector<8x64xf32>
    %123 = arith.mulf %118, %122 : vector<8x64xf32>
    %124 = arith.index_cast %100 : i32 to index
    %c0_51 = arith.constant 0 : index
    %125 = vector.load %arg13[%124, %c0_51] : memref<64x64xf32, #tpu.memory_space<vmem>>, vector<8x64xf32>
    tpu.vector_store %arg13[%124, %c0_51], %123 {strides = array<i32>} : memref<64x64xf32, #tpu.memory_space<vmem>>, vector<8x64xf32>,
    %c4_i32 = arith.constant 4 : i32
    %c8_i32_52 = arith.constant 8 : i32
    %126 = arith.muli %c4_i32, %c8_i32_52 : i32
    %127 = tpu.assume_multiple %126, 8 : i32
    %128 = arith.index_cast %127 : i32 to index
    %c0_53 = arith.constant 0 : index
    %129 = vector.load %arg12[%128, %c0_53] : memref<64x256xf32, #tpu.memory_space<vmem>>, vector<8x256xf32>
    %c0_54 = arith.constant 0 : index
    %c0_55 = arith.constant 0 : index
    %130 = vector.load %arg6[%c0_54, %c0_55] : memref<64x256xf32, #tpu.memory_space<vmem>>, vector<64x256xf32>
    %cst_56 = arith.constant dense<0.000000e+00> : vector<8x256xf32>
    %131 = tpu.matmul %123, %130, %cst_56 {dimension_numbers = #tpu.dot_dimension_numbers<[1], [0], [0], [1], [0, 0, 1, 1], [], []>} : vector<8x64xf32>, vector<64x256xf32>, vector<8x256xf32> -> vector<8x256xf32>
    %132 = arith.addf %129, %131 : vector<8x256xf32>
    %133 = vector.extract_strided_slice %132 {offsets = [0, 0], sizes = [8, 192], strides = [1, 1]} : vector<8x256xf32> to vector<8x192xf32>
    %cst_57 = arith.constant 5.000000e-01 : f32
    %134 = vector.broadcast %cst_57 : f32 to vector<8x192xf32>
    %135 = arith.mulf %134, %133 : vector<8x192xf32>
    %136 = math.tanh %135 : vector<8x192xf32>
    %cst_58 = arith.constant 5.000000e-01 : f32
    %137 = vector.broadcast %cst_58 : f32 to vector<8x192xf32>
    %138 = arith.mulf %137, %136 : vector<8x192xf32>
    %cst_59 = arith.constant 5.000000e-01 : f32
    %139 = vector.broadcast %cst_59 : f32 to vector<8x192xf32>
    %140 = arith.addf %138, %139 : vector<8x192xf32>
    %141 = vector.extract_strided_slice %132 {offsets = [0, 192], sizes = [8, 64], strides = [1, 1]} : vector<8x256xf32> to vector<8x64xf32>
    %142 = math.tanh %141 : vector<8x64xf32>
    %143 = vector.extract_strided_slice %140 {offsets = [0, 0], sizes = [8, 64], strides = [1, 1]} : vector<8x192xf32> to vector<8x64xf32>
    %144 = vector.extract_strided_slice %140 {offsets = [0, 64], sizes = [8, 64], strides = [1, 1]} : vector<8x192xf32> to vector<8x64xf32>
    %145 = vector.extract_strided_slice %140 {offsets = [0, 128], sizes = [8, 64], strides = [1, 1]} : vector<8x192xf32> to vector<8x64xf32>
    %146 = arith.mulf %143, %121 : vector<8x64xf32>
    %147 = arith.mulf %144, %142 : vector<8x64xf32>
    %148 = arith.addf %146, %147 : vector<8x64xf32>
    %149 = math.tanh %148 : vector<8x64xf32>
    %150 = arith.mulf %145, %149 : vector<8x64xf32>
    %151 = arith.index_cast %127 : i32 to index
    %c0_60 = arith.constant 0 : index
    %152 = vector.load %arg13[%151, %c0_60] : memref<64x64xf32, #tpu.memory_space<vmem>>, vector<8x64xf32>
    tpu.vector_store %arg13[%151, %c0_60], %150 {strides = array<i32>} : memref<64x64xf32, #tpu.memory_space<vmem>>, vector<8x64xf32>,
    %c5_i32 = arith.constant 5 : i32
    %c8_i32_61 = arith.constant 8 : i32
    %153 = arith.muli %c5_i32, %c8_i32_61 : i32
    %154 = tpu.assume_multiple %153, 8 : i32
    %155 = arith.index_cast %154 : i32 to index
    %c0_62 = arith.constant 0 : index
    %156 = vector.load %arg12[%155, %c0_62] : memref<64x256xf32, #tpu.memory_space<vmem>>, vector<8x256xf32>
    %c0_63 = arith.constant 0 : index
    %c0_64 = arith.constant 0 : index
    %157 = vector.load %arg6[%c0_63, %c0_64] : memref<64x256xf32, #tpu.memory_space<vmem>>, vector<64x256xf32>
    %cst_65 = arith.constant dense<0.000000e+00> : vector<8x256xf32>
    %158 = tpu.matmul %150, %157, %cst_65 {dimension_numbers = #tpu.dot_dimension_numbers<[1], [0], [0], [1], [0, 0, 1, 1], [], []>} : vector<8x64xf32>, vector<64x256xf32>, vector<8x256xf32> -> vector<8x256xf32>
    %159 = arith.addf %156, %158 : vector<8x256xf32>
    %160 = vector.extract_strided_slice %159 {offsets = [0, 0], sizes = [8, 192], strides = [1, 1]} : vector<8x256xf32> to vector<8x192xf32>
    %cst_66 = arith.constant 5.000000e-01 : f32
    %161 = vector.broadcast %cst_66 : f32 to vector<8x192xf32>
    %162 = arith.mulf %161, %160 : vector<8x192xf32>
    %163 = math.tanh %162 : vector<8x192xf32>
    %cst_67 = arith.constant 5.000000e-01 : f32
    %164 = vector.broadcast %cst_67 : f32 to vector<8x192xf32>
    %165 = arith.mulf %164, %163 : vector<8x192xf32>
    %cst_68 = arith.constant 5.000000e-01 : f32
    %166 = vector.broadcast %cst_68 : f32 to vector<8x192xf32>
    %167 = arith.addf %165, %166 : vector<8x192xf32>
    %168 = vector.extract_strided_slice %159 {offsets = [0, 192], sizes = [8, 64], strides = [1, 1]} : vector<8x256xf32> to vector<8x64xf32>
    %169 = math.tanh %168 : vector<8x64xf32>
    %170 = vector.extract_strided_slice %167 {offsets = [0, 0], sizes = [8, 64], strides = [1, 1]} : vector<8x192xf32> to vector<8x64xf32>
    %171 = vector.extract_strided_slice %167 {offsets = [0, 64], sizes = [8, 64], strides = [1, 1]} : vector<8x192xf32> to vector<8x64xf32>
    %172 = vector.extract_strided_slice %167 {offsets = [0, 128], sizes = [8, 64], strides = [1, 1]} : vector<8x192xf32> to vector<8x64xf32>
    %173 = arith.mulf %170, %148 : vector<8x64xf32>
    %174 = arith.mulf %171, %169 : vector<8x64xf32>
    %175 = arith.addf %173, %174 : vector<8x64xf32>
    %176 = math.tanh %175 : vector<8x64xf32>
    %177 = arith.mulf %172, %176 : vector<8x64xf32>
    %178 = arith.index_cast %154 : i32 to index
    %c0_69 = arith.constant 0 : index
    %179 = vector.load %arg13[%178, %c0_69] : memref<64x64xf32, #tpu.memory_space<vmem>>, vector<8x64xf32>
    tpu.vector_store %arg13[%178, %c0_69], %177 {strides = array<i32>} : memref<64x64xf32, #tpu.memory_space<vmem>>, vector<8x64xf32>,
    %c6_i32 = arith.constant 6 : i32
    %c8_i32_70 = arith.constant 8 : i32
    %180 = arith.muli %c6_i32, %c8_i32_70 : i32
    %181 = tpu.assume_multiple %180, 8 : i32
    %182 = arith.index_cast %181 : i32 to index
    %c0_71 = arith.constant 0 : index
    %183 = vector.load %arg12[%182, %c0_71] : memref<64x256xf32, #tpu.memory_space<vmem>>, vector<8x256xf32>
    %c0_72 = arith.constant 0 : index
    %c0_73 = arith.constant 0 : index
    %184 = vector.load %arg6[%c0_72, %c0_73] : memref<64x256xf32, #tpu.memory_space<vmem>>, vector<64x256xf32>
    %cst_74 = arith.constant dense<0.000000e+00> : vector<8x256xf32>
    %185 = tpu.matmul %177, %184, %cst_74 {dimension_numbers = #tpu.dot_dimension_numbers<[1], [0], [0], [1], [0, 0, 1, 1], [], []>} : vector<8x64xf32>, vector<64x256xf32>, vector<8x256xf32> -> vector<8x256xf32>
    %186 = arith.addf %183, %185 : vector<8x256xf32>
    %187 = vector.extract_strided_slice %186 {offsets = [0, 0], sizes = [8, 192], strides = [1, 1]} : vector<8x256xf32> to vector<8x192xf32>
    %cst_75 = arith.constant 5.000000e-01 : f32
    %188 = vector.broadcast %cst_75 : f32 to vector<8x192xf32>
    %189 = arith.mulf %188, %187 : vector<8x192xf32>
    %190 = math.tanh %189 : vector<8x192xf32>
    %cst_76 = arith.constant 5.000000e-01 : f32
    %191 = vector.broadcast %cst_76 : f32 to vector<8x192xf32>
    %192 = arith.mulf %191, %190 : vector<8x192xf32>
    %cst_77 = arith.constant 5.000000e-01 : f32
    %193 = vector.broadcast %cst_77 : f32 to vector<8x192xf32>
    %194 = arith.addf %192, %193 : vector<8x192xf32>
    %195 = vector.extract_strided_slice %186 {offsets = [0, 192], sizes = [8, 64], strides = [1, 1]} : vector<8x256xf32> to vector<8x64xf32>
    %196 = math.tanh %195 : vector<8x64xf32>
    %197 = vector.extract_strided_slice %194 {offsets = [0, 0], sizes = [8, 64], strides = [1, 1]} : vector<8x192xf32> to vector<8x64xf32>
    %198 = vector.extract_strided_slice %194 {offsets = [0, 64], sizes = [8, 64], strides = [1, 1]} : vector<8x192xf32> to vector<8x64xf32>
    %199 = vector.extract_strided_slice %194 {offsets = [0, 128], sizes = [8, 64], strides = [1, 1]} : vector<8x192xf32> to vector<8x64xf32>
    %200 = arith.mulf %197, %175 : vector<8x64xf32>
    %201 = arith.mulf %198, %196 : vector<8x64xf32>
    %202 = arith.addf %200, %201 : vector<8x64xf32>
    %203 = math.tanh %202 : vector<8x64xf32>
    %204 = arith.mulf %199, %203 : vector<8x64xf32>
    %205 = arith.index_cast %181 : i32 to index
    %c0_78 = arith.constant 0 : index
    %206 = vector.load %arg13[%205, %c0_78] : memref<64x64xf32, #tpu.memory_space<vmem>>, vector<8x64xf32>
    tpu.vector_store %arg13[%205, %c0_78], %204 {strides = array<i32>} : memref<64x64xf32, #tpu.memory_space<vmem>>, vector<8x64xf32>,
    %c7_i32 = arith.constant 7 : i32
    %c8_i32_79 = arith.constant 8 : i32
    %207 = arith.muli %c7_i32, %c8_i32_79 : i32
    %208 = tpu.assume_multiple %207, 8 : i32
    %209 = arith.index_cast %208 : i32 to index
    %c0_80 = arith.constant 0 : index
    %210 = vector.load %arg12[%209, %c0_80] : memref<64x256xf32, #tpu.memory_space<vmem>>, vector<8x256xf32>
    %c0_81 = arith.constant 0 : index
    %c0_82 = arith.constant 0 : index
    %211 = vector.load %arg6[%c0_81, %c0_82] : memref<64x256xf32, #tpu.memory_space<vmem>>, vector<64x256xf32>
    %cst_83 = arith.constant dense<0.000000e+00> : vector<8x256xf32>
    %212 = tpu.matmul %204, %211, %cst_83 {dimension_numbers = #tpu.dot_dimension_numbers<[1], [0], [0], [1], [0, 0, 1, 1], [], []>} : vector<8x64xf32>, vector<64x256xf32>, vector<8x256xf32> -> vector<8x256xf32>
    %213 = arith.addf %210, %212 : vector<8x256xf32>
    %214 = vector.extract_strided_slice %213 {offsets = [0, 0], sizes = [8, 192], strides = [1, 1]} : vector<8x256xf32> to vector<8x192xf32>
    %cst_84 = arith.constant 5.000000e-01 : f32
    %215 = vector.broadcast %cst_84 : f32 to vector<8x192xf32>
    %216 = arith.mulf %215, %214 : vector<8x192xf32>
    %217 = math.tanh %216 : vector<8x192xf32>
    %cst_85 = arith.constant 5.000000e-01 : f32
    %218 = vector.broadcast %cst_85 : f32 to vector<8x192xf32>
    %219 = arith.mulf %218, %217 : vector<8x192xf32>
    %cst_86 = arith.constant 5.000000e-01 : f32
    %220 = vector.broadcast %cst_86 : f32 to vector<8x192xf32>
    %221 = arith.addf %219, %220 : vector<8x192xf32>
    %222 = vector.extract_strided_slice %213 {offsets = [0, 192], sizes = [8, 64], strides = [1, 1]} : vector<8x256xf32> to vector<8x64xf32>
    %223 = math.tanh %222 : vector<8x64xf32>
    %224 = vector.extract_strided_slice %221 {offsets = [0, 0], sizes = [8, 64], strides = [1, 1]} : vector<8x192xf32> to vector<8x64xf32>
    %225 = vector.extract_strided_slice %221 {offsets = [0, 64], sizes = [8, 64], strides = [1, 1]} : vector<8x192xf32> to vector<8x64xf32>
    %226 = vector.extract_strided_slice %221 {offsets = [0, 128], sizes = [8, 64], strides = [1, 1]} : vector<8x192xf32> to vector<8x64xf32>
    %227 = arith.mulf %224, %202 : vector<8x64xf32>
    %228 = arith.mulf %225, %223 : vector<8x64xf32>
    %229 = arith.addf %227, %228 : vector<8x64xf32>
    %230 = math.tanh %229 : vector<8x64xf32>
    %231 = arith.mulf %226, %230 : vector<8x64xf32>
    %232 = arith.index_cast %208 : i32 to index
    %c0_87 = arith.constant 0 : index
    %233 = vector.load %arg13[%232, %c0_87] : memref<64x64xf32, #tpu.memory_space<vmem>>, vector<8x64xf32>
    tpu.vector_store %arg13[%232, %c0_87], %231 {strides = array<i32>} : memref<64x64xf32, #tpu.memory_space<vmem>>, vector<8x64xf32>,
    %c8_i32_88 = arith.constant 8 : i32
    %c0_89 = arith.constant 0 : index
    %c0_90 = arith.constant 0 : index
    %234 = vector.load %arg13[%c0_89, %c0_90] : memref<64x64xf32, #tpu.memory_space<vmem>>, vector<64x64xf32>
    %235 = arith.truncf %234 : vector<64x64xf32> to vector<64x64xbf16>
    %c0_91 = arith.constant 0 : index
    %c0_92 = arith.constant 0 : index
    %236 = vector.load %arg8[%c0_91, %c0_92] : memref<64x128xbf16, #tpu.memory_space<vmem>>, vector<64x128xbf16>
    %cst_93 = arith.constant dense<0.000000e+00> : vector<64x128xf32>
    %237 = tpu.matmul %235, %236, %cst_93 {dimension_numbers = #tpu.dot_dimension_numbers<[1], [0], [0], [1], [0, 0, 1, 1], [], []>} : vector<64x64xbf16>, vector<64x128xbf16>, vector<64x128xf32> -> vector<64x128xf32>
    %c0_94 = arith.constant 0 : index
    %c0_95 = arith.constant 0 : index
    %238 = vector.load %arg9[%c0_94, %c0_95] : memref<1x128xf32, #tpu.memory_space<vmem>>, vector<1x128xf32>
    %239 = vector.broadcast %238 : vector<1x128xf32> to vector<64x128xf32>
    %240 = arith.addf %237, %239 : vector<64x128xf32>
    %241 = math.tanh %240 : vector<64x128xf32>
    %cst_96 = arith.constant 2.000000e+00 : f32
    %242 = vector.broadcast %cst_96 : f32 to vector<64x128xf32>
    %243 = arith.mulf %242, %241 : vector<64x128xf32>
    %c0_97 = arith.constant 0 : index
    %c0_98 = arith.constant 0 : index
    %244 = vector.load %arg10[%c0_97, %c0_98] : memref<64x128xf32, #tpu.memory_space<vmem>>, vector<64x128xf32>
    tpu.vector_store %arg10[%c0_97, %c0_98], %243 {strides = array<i32>} : memref<64x128xf32, #tpu.memory_space<vmem>>, vector<64x128xf32>,
    %245 = tpu.concatenate %231, %229 in 1 : vector<8x64xf32>, vector<8x64xf32> -> vector<8x128xf32>
    %c0_99 = arith.constant 0 : index
    %c0_100 = arith.constant 0 : index
    %246 = vector.load %arg11[%c0_99, %c0_100] : memref<8x128xf32, #tpu.memory_space<vmem>>, vector<8x128xf32>
    tpu.vector_store %arg11[%c0_99, %c0_100], %245 {strides = array<i32>} : memref<8x128xf32, #tpu.memory_space<vmem>>, vector<8x128xf32>,
    return
  }
}

</mosaic_0001>

<bundles_post_ra>
// kernel: actor_forward.1
= control target key start
LH: loop header
LB: loop body
LE: loop exit
PB: predicated region body
PF: predicated region fallthrough
CT: control target
= control target key end

     0   :  { %17 = vsyncpa [#allocation5], 0  ;;  %s2203_s0 = inlined_call_operand.vmem [shape: f32[64,12], index: 0, kind: input, shape index: {}]   ;;  %s2204_s1 = inlined_call_operand.vmem [shape: f32[8,64], index: 1, kind: input, shape index: {}]   ;;  %s2205_s2 = inlined_call_operand.vmem [shape: f32[8,64], index: 2, kind: input, shape index: {}]   ;;  %s2206_s3 = inlined_call_operand.vmem [shape: bf16[12,64], index: 3, kind: input, shape index: {}]   ;;  %s2207_s4 = inlined_call_operand.vmem [shape: f32[1,64], index: 4, kind: input, shape index: {}]   ;;  %s2208_s5 = inlined_call_operand.hbm [shape: bf16[64,256], index: 5, kind: input, shape index: {}]   ;;  %s2209_s6 = inlined_call_operand.vmem [shape: f32[64,256], index: 6, kind: input, shape index: {}]   ;;  %s2210_s7 = inlined_call_operand.vmem [shape: f32[1,256], index: 7, kind: input, shape index: {}]   ;;  %s2211_s8 = inlined_call_operand.hbm [shape: bf16[64,128], index: 8, kind: input, shape index: {}]   ;;  %s2212_s9 = inlined_call_operand.vmem [shape: f32[1,128], index: 9, kind: input, shape index: {}]   ;;  %s2213_s10 = inlined_call_operand.vmem [shape: f32[64,128], index: 10, kind: output, shape index: {0}]   ;;  %s2214_s11 = inlined_call_operand.vmem [shape: f32[8,128], index: 11, kind: output, shape index: {1}]  }
   0x1   :  { %18 = vsyncpa [#allocation7], 0  ;;  %s1692_s17 = smov [#allocation4]  }
   0x2   :  { %s34_s18 = sshll.u32 %s1692_s17, 4  ;;  %s35_s18 = int_to_ptr.vmem [resolvable:$true] %s34_s18 }
   0x3   :  { %s1656_s19 = scalar_lea.vmem %s35_s18, 1024  ;;  %p1661_p1 = scmp.lt.s32.totalorder %s35_s18, %s35_s18 }
   0x4   :  { %p1657_p0 = scmp.ne.s32.totalorder %s35_s18, %s1656_s19  ;;  %p1662_p2 = scmp.lt.s32.totalorder %s1656_s19, %s1656_s19 }
   0x6   :  { %p1663_p3 = por %p1662_p2, %p1661_p1 }
   0x8   :  { %p1664_p4 = pnand %p1663_p3, %p1657_p0 }
   0xa   :  { %1667 = shalt.err (!%p1664_p4)
}
   0xb   :  { %s1693_s20 = smov 128   ;;  %s1694_s21 = smov 8  }
   0xc   :  { %40 = dma.hbm_to_vmem [thread:$0]  %s2208_s5, 1024, %s35_s18, [#allocation5], %s1693_s20, %s1693_s20, %s1694_s21  }
   0xd   :  { %s1695_s24 = smov [#allocation6]  }
   0xe   :  { %s50_s25 = sshll.u32 %s1695_s24, 4  ;;  %s51_s25 = int_to_ptr.vmem [resolvable:$true] %s50_s25 }
   0xf   :  { %s1676_s26 = scalar_lea.vmem %s51_s25, 512  ;;  %p1681_p6 = scmp.lt.s32.totalorder %s51_s25, %s51_s25 }
  0x10   :  { %p1677_p5 = scmp.ne.s32.totalorder %s51_s25, %s1676_s26  ;;  %p1682_p7 = scmp.lt.s32.totalorder %s1676_s26, %s1676_s26 }
  0x12   :  { %p1683_p8 = por %p1682_p7, %p1681_p6 }
  0x14   :  { %p1684_p9 = pnand %p1683_p8, %p1677_p5 }
  0x16   :  { %1687 = shalt.err (!%p1684_p9)
}
  0x17   :  { %s1696_s27 = smov 64   ;;  %s1697_s28 = smov 4  }
  0x18   :  { %56 = dma.hbm_to_vmem [thread:$0]  %s2211_s8, 512, %s51_s25, [#allocation7], %s1696_s27, %s1696_s27, %s1697_s28  }
  0x19   :  { %1688 = dma.done.wait [#allocation5], 1024  }
  0x1a   :  { %1689 = vsyncadd [#allocation5], 4294966272 }
  0x1b   :  { %1690 = dma.done.wait [#allocation7], 512  }
  0x1c   :  { %1691 = vsyncadd [#allocation7], 4294966784  ;;  %vm105_vm0 = vcmask 1045504   ;;  %v1551_v0 = vld [vmem:[%s2206_s3] sm:$0x3f]   ;;  %v67_v2 = vld [vmem:[%s2203_s0 + $0x8] sm:$0xff]  ;;  %v196_v50 = vlaneseq }
  0x1d   :  { %v66_v1 = vld [vmem:[%s2203_s0] sm:$0xff]  ;;  %vm92_vm1 = vcmask 97280   ;;  %v68_v3 = vld [vmem:[%s2203_s0 + $0x10] sm:$0xff]  ;;  %1542 = vmatprep.subr.msk.bf16.mxu1 %vm105_vm0, %v1551_v0  ;;  %v107_v4 = vsel %vm105_vm0, %v1551_v0, 0  ;;  %v69_v6 = vld [vmem:[%s2203_s0 + $0x18] sm:$0xff]  ;;  %v1698_v17 = vmov 0  }
  0x1e   :  { %v74_v5 = vpack.c.bf16 %v67_v2, %v66_v1  ;;  %1509 = vmatpush3.bf16.msra.mxu1 %v107_v4  ;;  %v75_v7 = vpack.c.bf16 %v69_v6, %v68_v3  ;;  %v1552_v8 = vld [vmem:[#allocation4 + $0x34] ss:$8 sps:$4 sm:$0xff]   ;;  %v1554_v9 = vld [vmem:[#allocation4 + $0x30] ss:$8 sps:$4 sm:$0xff]   ;;  %v1555_v10 = vld [vmem:[#allocation4 + $0x24] ss:$8 sps:$4 sm:$0xff]   ;;  %291 = vmatprep.mubr.bf16.mxu0 %v1698_v17 }
  0x1f   :  { %267 = vmatprep.subr.bf16.mxu0 %v1552_v8  ;;  %1534 = vmatprep.subr.bf16.mxu1 %v1552_v8  ;;  %v1557_v11 = vld [vmem:[#allocation4 + $0x20] ss:$8 sps:$4 sm:$0xff]   ;;  %v1558_v12 = vld [vmem:[#allocation4 + $0x14] ss:$8 sps:$4 sm:$0xff]   ;;  %v1560_v13 = vld [vmem:[#allocation4 + $0x10] ss:$8 sps:$4 sm:$0xff]  }
  0x20   :  { %1510 = vmatprep.mubr.msk.bf16.mxu1 %vm92_vm1, %v74_v5  ;;  %268 = vmatpush1.bf16.msra.mxu0 %v1554_v9  ;;  %v1561_v14 = vld [vmem:[#allocation4 + $0x4] ss:$8 sps:$4 sm:$0xff]   ;;  %v1563_v15 = vld [vmem:[#allocation4] ss:$8 sps:$4 sm:$0xff]   ;;  %v1788_v16 = vld [vmem:[%s2209_s6 + $0x78] sm:$0xff]  ;;  %vm246_vm2 = vcmask 523264  }
  0x21   :  { %1511 = vmatmul.mubr.msk.bf16.vlgmr.msra.gmra.mxu1 %vm92_vm1, %v75_v7  ;;  %269 = vmatprep.subr.bf16.mxu0 %v1555_v10  ;;  %v1796_v20 = vld [vmem:[%s2207_s4] ss:$0 sm:$0xff]  ;;  %v1804_v29 = vld [vmem:[%s2209_s6 + $0x70] sm:$0xff]  ;;  %v1809_v30 = vld [vmem:[%s2209_s6 + $0x68] sm:$0xff]  ;;  %v1699_v45 = vmov 0.0   ;;  %v197_v53 = vshrl.u32 %v196_v50, 7 }
  0x22   :  { %1538 = vmatpush1.bf16.msra.mxu1 %v1554_v9  ;;  %v1816_v32 = vld [vmem:[%s2209_s6 + $0x60] sm:$0xff]  ;;  %v1822_v33 = vld [vmem:[%s2209_s6 + $0x58] sm:$0xff]  ;;  %v1829_v35 = vld [vmem:[%s2209_s6 + $0x50] sm:$0xff] }
  0x23   :  { %1535 = vmatprep.subr.bf16.mxu1 %v1555_v10  ;;  %v1835_v36 = vld [vmem:[%s2209_s6 + $0x48] sm:$0xff]  ;;  %v1841_v38 = vld [vmem:[%s2209_s6 + $0x40] sm:$0xff]  ;;  %v1847_v39 = vld [vmem:[%s2209_s6 + $0x38] sm:$0xff]  ;;  %v198_v56 = vsub.s32 0, %v197_v53  ;;  %v202_v61 = vsub.s32 1, %v197_v53 }
  0x24   :  { %270 = vmatpush1.bf16.msra.mxu0 %v1557_v11  ;;  %v1853_v41 = vld [vmem:[%s2209_s6 + $0x30] sm:$0xff]  ;;  %v1859_v42 = vld [vmem:[%s2209_s6 + $0x28] sm:$0xff]  ;;  %v1866_v43 = vld [vmem:[%s2209_s6 + $0x20] sm:$0xff] }
  0x25   :  { %271 = vmatprep.subr.bf16.mxu0 %v1558_v12  ;;  %v1872_v44 = vld [vmem:[%s2209_s6 + $0x18] sm:$0xff]  ;;  %v1879_v46 = vld [vmem:[%s2209_s6 + $0x10] sm:$0xff]  ;;  %v1885_v47 = vld [vmem:[%s2209_s6 + $0x8] sm:$0xff] }
  0x26   :  { %1539 = vmatpush1.bf16.msra.mxu1 %v1557_v11  ;;  %v1891_v48 = vld [vmem:[%s2209_s6] sm:$0xff] }
  0x27   :  { %1536 = vmatprep.subr.bf16.mxu1 %v1558_v12  ;;  %v348_v49 = vld [vmem:[%s2204_s1] sm:$0xff] }
  0x28   :  { %272 = vmatpush1.bf16.msra.mxu0 %v1560_v13  ;;  %v194_v57 = vld [vmem:[%s2210_s7] sm:$0x3] }
  0x29   :  { %273 = vmatprep.subr.bf16.mxu0 %v1561_v14  ;;  %v1929_v60 = vrot.slane %v194_v57, %v198_v56  ;;  %v1936_v1 = vrot.slane %v194_v57, %v202_v61 }
  0x2a   :  { %1540 = vmatpush1.bf16.msra.mxu1 %v1560_v13  ;;  %v70_v13 = vld [vmem:[%s2203_s0 + $0x20] sm:$0xff] }
  0x2b   :  { %1537 = vmatprep.subr.bf16.mxu1 %v1561_v14  ;;  %v71_v14 = vld [vmem:[%s2203_s0 + $0x28] sm:$0xff] }
  0x2c   :  { %274 = vmatpush1.bf16.msra.mxu0 %v1563_v15 }
  0x2d   :  { %390 = vmatprep.subr.mxu0 %v1788_v16 }
  0x2e   :  { %1541 = vmatpush1.bf16.msra.mxu1 %v1563_v15  ;;  %v72_v15 = vld [vmem:[%s2203_s0 + $0x30] sm:$0xff] }
  0x2f   :  { %623 = vmatprep.subr.mxu1 %v1788_v16 }
  0xe1   :  { %v1512_v18 = vpop.f32.mrf.mxu1 }
  0xe2   :  { %v152_v31 = vadd.f32 %v1512_v18, %v1796_v20  ;;  %v76_v18 = vpack.c.bf16 %v71_v14, %v70_v13 }
  0xe3   :  { %v143_v19 = vpop.f32.mrf.mxu1 }
  0xe4   :  { %v144_v22 = vadd.f32 %v1796_v20, %v143_v19  ;;  %v176_v37 = vmax.f32 %v152_v31, 0.0  ;;  %v73_v19 = vld [vmem:[%s2203_s0 + $0x38] sm:$0xff]  ;;  %1514 = vmatprep.mubr.msk.bf16.mxu1 %vm92_vm1, %v76_v18 }
  0xe5   :  { %v1513_v21 = vpop.f32.mrf.mxu1 }
  0xe6   :  { %v174_v25 = vmax.f32 %v144_v22, 0.0  ;;  %v155_v27 = vadd.f32 %v1513_v21, %v1796_v20  ;;  %v77_v21 = vpack.c.bf16 %v73_v19, %v72_v15 }
  0xe7   :  { %v146_v23 = vpop.f32.mrf.mxu1 }
  0xe8   :  { %v147_v24 = vadd.f32 %v1796_v20, %v146_v23  ;;  %v177_v34 = vmax.f32 %v155_v27, 0.0  ;;  %1515 = vmatmul.mubr.msk.bf16.gmra.mxu1 %vm92_vm1, %v77_v21  ;;  %v349_v23 = vld [vmem:[%s2205_s2] sm:$0xff] }
  0xe9   :  { %311 = vmatprep.mubr.bf16.mxu1 %v1698_v17 }
  0xea   :  { %v175_v26 = vmax.f32 %v147_v24, 0.0  ;;  %v183_v40 = vpack.c.bf16 %v177_v34, %v176_v37 }
  0xec   :  { %v182_v28 = vpack.c.bf16 %v175_v26, %v174_v25 }
  0xee   :  { %1474 = vmatmul.mubr.msk.bf16.vlgmr.msra.gmra.mxu0 %vm246_vm2, %v182_v28 }
  0xef   :  { %391 = vmatpush1.msra.mxu0 %v1804_v29  ;;  %301 = vmatprep.mubr.bf16.mxu0 %v1698_v17 }
  0xf0   :  { %392 = vmatprep.subr.mxu0 %v1809_v30 }
  0xf1   :  { %393 = vmatpush1.msra.mxu0 %v1816_v32 }
  0xf2   :  { %394 = vmatprep.subr.mxu0 %v1822_v33 }
  0xf3   :  { %395 = vmatpush1.msra.mxu0 %v1829_v35 }
  0xf4   :  { %396 = vmatprep.subr.mxu0 %v1835_v36 }
  0xf5   :  { %397 = vmatpush1.msra.mxu0 %v1841_v38 }
  0xf6   :  { %398 = vmatprep.subr.mxu0 %v1847_v39  ;;  %1475 = vmatmul.mubr.msk.bf16.gmra.mxu0 %vm246_vm2, %v183_v40 }
  0xf7   :  { %399 = vmatpush1.msra.mxu0 %v1853_v41  ;;  %438 = vmatprep.mubr.f32.mxu0 %v1699_v45 }
  0xf8   :  { %400 = vmatprep.subr.mxu0 %v1859_v42 }
  0xf9   :  { %401 = vmatpush1.msra.mxu0 %v1866_v43 }
  0xfa   :  { %402 = vmatprep.subr.mxu0 %v1872_v44 }
  0xfb   :  { %403 = vmatpush1.msra.mxu0 %v1879_v46 }
  0xfc   :  { %404 = vmatprep.subr.mxu0 %v1885_v47 }
  0xfd   :  { %405 = vmatpush1.msra.mxu0 %v1891_v48 }
  0xfe   :  { %1478 = vmatmul.mubr.msk.f32.vlgmr.msra.gmra.mxu0 %vm246_vm2, %v348_v49  ;;  %506 = vmatprep.subr.mxu0 %v1788_v16 }
  0xff   :  { %507 = vmatpush1.msra.mxu0 %v1804_v29  ;;  %554 = vmatprep.mubr.f32.mxu0 %v1699_v45 }
 0x100   :  { %508 = vmatprep.subr.mxu0 %v1809_v30 }
 0x101   :  { %509 = vmatpush1.msra.mxu0 %v1816_v32 }
 0x102   :  { %510 = vmatprep.subr.mxu0 %v1822_v33 }
 0x103   :  { %511 = vmatpush1.msra.mxu0 %v1829_v35 }
 0x104   :  { %512 = vmatprep.subr.mxu0 %v1835_v36 }
 0x105   :  { %513 = vmatpush1.msra.mxu0 %v1841_v38 }
 0x106   :  { %514 = vmatprep.subr.mxu0 %v1847_v39 }
 0x107   :  { %515 = vmatpush1.msra.mxu0 %v1853_v41 }
 0x108   :  { %516 = vmatprep.subr.mxu0 %v1859_v42 }
 0x109   :  { %517 = vmatpush1.msra.mxu0 %v1866_v43 }
 0x10a   :  { %518 = vmatprep.subr.mxu0 %v1872_v44 }
 0x10b   :  { %519 = vmatpush1.msra.mxu0 %v1879_v46 }
 0x10c   :  { %520 = vmatprep.subr.mxu0 %v1885_v47 }
 0x10d   :  { %521 = vmatpush1.msra.mxu0 %v1891_v48 }
 0x10e   :  { %740 = vmatprep.subr.mxu0 %v1788_v16 }
 0x1a8   :  { %v1516_v40 = vpop.f32.mrf.mxu1 }
 0x1a9   :  { %v168_v57 = vadd.f32 %v1516_v40, %v1796_v20 }
 0x1aa   :  { %v159_v49 = vpop.f32.mrf.mxu1 }
 0x1ab   :  { %v160_v50 = vadd.f32 %v1796_v20, %v159_v49 }
 0x1ad   :  { %v178_v53 = vmax.f32 %v160_v50, 0.0 }
 0x1ae   :  { %v293_v51 = vpop.f32.mrf.mxu0 }
 0x1af   :  { %v294_v0 = vadd.f32 %v293_v51, %v1929_v60  ;;  %v1517_v51 = vpop.f32.mrf.mxu1 }
 0x1b0   :  { %v295_v52 = vpop.f32.mrf.mxu0  ;;  %v171_v61 = vadd.f32 %v1517_v51, %v1796_v20 }
 0x1b1   :  { %v296_v5 = vadd.f32 %v295_v52, %v1936_v1  ;;  %v162_v52 = vpop.f32.mrf.mxu1 }
 0x1b2   :  { %v1918_v54 = vpop.f32.mrf.mxu0  ;;  %v163_v56 = vadd.f32 %v1796_v20, %v162_v52 }
 0x1b4   :  { %v1920_v55 = vpop.f32.mrf.mxu0 }
 0x1b6   :  { %v1925_v58 = vpop.f32.mrf.mxu0 }
 0x1b7   :  { %v304_v50 = vadd.f32 %v1925_v58, %v1929_v60 }
 0x1b8   :  { %v1927_v59 = vpop.f32.mrf.mxu0 }
 0x1ba   :  { %v1931_v62 = vpop.f32.mrf.mxu0 }
 0x1bc   :  { %v1933_v63 = vpop.f32.mrf.mxu0 }
 0x1be   :  { %v440_v2 = vpop.f32.mrf.mxu0 }
 0x1bf   :  { %v445_v3 = vadd.f32 %v440_v2, %v294_v0  ;;  %v179_v0 = vmax.f32 %v163_v56, 0.0 }
 0x1c0   :  { %v442_v4 = vpop.f32.mrf.mxu0 }
 0x1c1   :  { %v447_v6 = vmul.f32 0.5, %v445_v3  ;;  %v446_v7 = vadd.f32 %v442_v4, %v296_v5  ;;  %v184_v2 = vpack.c.bf16 %v179_v0, %v178_v53  ;;  %v180_v3 = vmax.f32 %v168_v57, 0.0 }
 0x1c2   :  { %v181_v4 = vmax.f32 %v171_v61, 0.0  ;;  %v306_v53 = vadd.f32 %v1927_v59, %v1936_v1 }
 0x1c3   :  { %1568 = vtanh.f32 %v447_v6  ;;  %v448_v22 = vmul.f32 0.5, %v446_v7  ;;  %1476 = vmatmul.mubr.msk.bf16.vlgmr.msra.gmra.mxu1 %vm246_vm2, %v184_v2 }
 0x1c4   :  { %1570 = vtanh.f32 %v446_v7  ;;  %321 = vmatprep.mubr.bf16.mxu1 %v1698_v17  ;;  %624 = vmatpush1.msra.mxu1 %v1804_v29  ;;  %v185_v5 = vpack.c.bf16 %v181_v4, %v180_v3  ;;  %v298_v17 = vadd.f32 %v1918_v54, %v1929_v60 }
 0x1c5   :  { %1572 = vtanh.f32 %v448_v22  ;;  %625 = vmatprep.subr.mxu1 %v1809_v30 }
 0x1c6   :  { %626 = vmatpush1.msra.mxu1 %v1816_v32 }
 0x1c7   :  { %627 = vmatprep.subr.mxu1 %v1822_v33 }
 0x1c8   :  { %628 = vmatpush1.msra.mxu1 %v1829_v35 }
 0x1c9   :  { %629 = vmatprep.subr.mxu1 %v1835_v36 }
 0x1ca   :  { %630 = vmatpush1.msra.mxu1 %v1841_v38 }
 0x1cb   :  { %1477 = vmatmul.mubr.msk.bf16.gmra.mxu1 %vm246_vm2, %v185_v5  ;;  %631 = vmatprep.subr.mxu1 %v1847_v39 }
 0x1cc   :  { %632 = vmatpush1.msra.mxu1 %v1853_v41  ;;  %671 = vmatprep.mubr.f32.mxu1 %v1699_v45 }
 0x1cd   :  { %633 = vmatprep.subr.mxu1 %v1859_v42 }
 0x1ce   :  { %634 = vmatpush1.msra.mxu1 %v1866_v43 }
 0x1cf   :  { %635 = vmatprep.subr.mxu1 %v1872_v44 }
 0x1d0   :  { %v1569_v8 = vpop.eup %1568  ;;  %636 = vmatpush1.msra.mxu1 %v1879_v46 }
 0x1d1   :  { %v451_v9 = vmul.f32 0.5, %v1569_v8  ;;  %v1571_v11 = vpop.eup %1570  ;;  %637 = vmatprep.subr.mxu1 %v1885_v47  ;;  %v300_v8 = vadd.f32 %v1920_v55, %v1936_v1 }
 0x1d2   :  { %v1573_v27 = vpop.eup %1572  ;;  %638 = vmatpush1.msra.mxu1 %v1891_v48 }
 0x1d3   :  { %v453_v10 = vadd.f32 0.5, %v451_v9  ;;  %v452_v28 = vmul.f32 0.5, %v1573_v27  ;;  %857 = vmatprep.subr.mxu1 %v1788_v16 }
 0x1d5   :  { %v457_v12 = vmul.f32 %v1571_v11, %v453_v10  ;;  %v456_v24 = vmul.f32 %v453_v10, %v349_v23  ;;  %v454_v31 = vadd.f32 0.5, %v452_v28 }
 0x1d7   :  { %459 = vrot.lane.b32.xlu0 %v457_v12, %s1696_s27 }
 0x249   :  { %v460_v25 = vpop.permute.xlu0 %459 }
 0x24a   :  { %v1958_v26 = vadd.f32 %v460_v25, %v456_v24 }
 0x24c   :  { %1574 = vtanh.f32 %v1958_v26 }
 0x259   :  { %v1575_v34 = vpop.eup %1574 }
 0x25a   :  { %v464_v37 = vmul.f32 %v1575_v34, %v454_v31 }
 0x25c   :  { %465 = vst.msk [vmem:[#allocation3] sm:$0xff] %vm246_vm2, %v464_v37  ;;  %1479 = vmatmul.mubr.msk.f32.vlgmr.msra.gmra.mxu0 %vm246_vm2, %v464_v37 }
 0x25d   :  { %741 = vmatpush1.msra.mxu0 %v1804_v29  ;;  %788 = vmatprep.mubr.f32.mxu0 %v1699_v45 }
 0x25e   :  { %742 = vmatprep.subr.mxu0 %v1809_v30 }
 0x25f   :  { %743 = vmatpush1.msra.mxu0 %v1816_v32 }
 0x260   :  { %744 = vmatprep.subr.mxu0 %v1822_v33 }
 0x261   :  { %745 = vmatpush1.msra.mxu0 %v1829_v35 }
 0x262   :  { %746 = vmatprep.subr.mxu0 %v1835_v36 }
 0x263   :  { %747 = vmatpush1.msra.mxu0 %v1841_v38 }
 0x264   :  { %748 = vmatprep.subr.mxu0 %v1847_v39 }
 0x265   :  { %749 = vmatpush1.msra.mxu0 %v1853_v41 }
 0x266   :  { %750 = vmatprep.subr.mxu0 %v1859_v42 }
 0x267   :  { %751 = vmatpush1.msra.mxu0 %v1866_v43 }
 0x268   :  { %752 = vmatprep.subr.mxu0 %v1872_v44 }
 0x269   :  { %753 = vmatpush1.msra.mxu0 %v1879_v46 }
 0x26a   :  { %754 = vmatprep.subr.mxu0 %v1885_v47 }
 0x26b   :  { %755 = vmatpush1.msra.mxu0 %v1891_v48 }
 0x26c   :  { %974 = vmatprep.subr.mxu0 %v1788_v16 }
 0x31c   :  { %v556_v20 = vpop.f32.mrf.mxu0 }
 0x31d   :  { %v561_v6 = vadd.f32 %v556_v20, %v298_v17 }
 0x31e   :  { %v558_v7 = vpop.f32.mrf.mxu0 }
 0x31f   :  { %v563_v9 = vmul.f32 0.5, %v561_v6  ;;  %v562_v10 = vadd.f32 %v558_v7, %v300_v8 }
 0x321   :  { %1576 = vtanh.f32 %v563_v9  ;;  %v564_v18 = vmul.f32 0.5, %v562_v10 }
 0x322   :  { %1578 = vtanh.f32 %v562_v10  ;;  %v308_v10 = vadd.f32 %v1931_v62, %v1929_v60 }
 0x323   :  { %1580 = vtanh.f32 %v564_v18 }
 0x32e   :  { %v1577_v11 = vpop.eup %1576 }
 0x32f   :  { %v567_v12 = vmul.f32 0.5, %v1577_v11  ;;  %v1579_v14 = vpop.eup %1578 }
 0x330   :  { %v1581_v22 = vpop.eup %1580 }
 0x331   :  { %v569_v13 = vadd.f32 0.5, %v567_v12  ;;  %v568_v55 = vmul.f32 0.5, %v1581_v22 }
 0x333   :  { %v573_v15 = vmul.f32 %v1579_v14, %v569_v13  ;;  %v572_v54 = vmul.f32 %v569_v13, %v1958_v26  ;;  %v570_v23 = vadd.f32 0.5, %v568_v55  ;;  %v2029_v26 = vpop.f32.mrf.mxu1  ;;  %v310_v14 = vadd.f32 %v1933_v63, %v1936_v1 }
 0x335   :  { %575 = vrot.lane.b32.xlu0 %v573_v15, %s1696_s27  ;;  %v2031_v27 = vpop.f32.mrf.mxu1 }
 0x337   :  { %v2033_v28 = vpop.f32.mrf.mxu1 }
 0x339   :  { %v2035_v31 = vpop.f32.mrf.mxu1 }
 0x33b   :  { %v2037_v34 = vpop.f32.mrf.mxu1 }
 0x33d   :  { %v2039_v37 = vpop.f32.mrf.mxu1 }
 0x33f   :  { %v2041_v40 = vpop.f32.mrf.mxu1 }
 0x341   :  { %v2043_v49 = vpop.f32.mrf.mxu1 }
 0x3a7   :  { %v576_v19 = vpop.permute.xlu0 %575 }
 0x3a8   :  { %v578_v21 = vadd.f32 %v576_v19, %v572_v54 }
 0x3aa   :  { %1582 = vtanh.f32 %v578_v21 }
 0x3b7   :  { %v1583_v24 = vpop.eup %1582 }
 0x3b8   :  { %v580_v25 = vmul.f32 %v1583_v24, %v570_v23 }
 0x3ba   :  { %582 = vst.msk [vmem:[#allocation3 + $0x8] sm:$0xff] %vm246_vm2, %v580_v25  ;;  %1480 = vmatmul.mubr.msk.f32.vlgmr.msra.gmra.mxu1 %vm246_vm2, %v580_v25 }
 0x3bb   :  { %858 = vmatpush1.msra.mxu1 %v1804_v29  ;;  %905 = vmatprep.mubr.f32.mxu1 %v1699_v45 }
 0x3bc   :  { %859 = vmatprep.subr.mxu1 %v1809_v30 }
 0x3bd   :  { %860 = vmatpush1.msra.mxu1 %v1816_v32 }
 0x3be   :  { %861 = vmatprep.subr.mxu1 %v1822_v33 }
 0x3bf   :  { %862 = vmatpush1.msra.mxu1 %v1829_v35 }
 0x3c0   :  { %863 = vmatprep.subr.mxu1 %v1835_v36 }
 0x3c1   :  { %864 = vmatpush1.msra.mxu1 %v1841_v38 }
 0x3c2   :  { %865 = vmatprep.subr.mxu1 %v1847_v39 }
 0x3c3   :  { %866 = vmatpush1.msra.mxu1 %v1853_v41 }
 0x3c4   :  { %867 = vmatprep.subr.mxu1 %v1859_v42 }
 0x3c5   :  { %868 = vmatpush1.msra.mxu1 %v1866_v43 }
 0x3c6   :  { %869 = vmatprep.subr.mxu1 %v1872_v44 }
 0x3c7   :  { %870 = vmatpush1.msra.mxu1 %v1879_v46 }
 0x3c8   :  { %871 = vmatprep.subr.mxu1 %v1885_v47 }
 0x3c9   :  { %872 = vmatpush1.msra.mxu1 %v1891_v48 }
 0x3ca   :  { %1091 = vmatprep.subr.mxu1 %v1788_v16 }
 0x47a   :  { %v673_v16 = vpop.f32.mrf.mxu1 }
 0x47b   :  { %v678_v51 = vadd.f32 %v673_v16, %v304_v50 }
 0x47c   :  { %v675_v52 = vpop.f32.mrf.mxu1 }
 0x47d   :  { %v680_v56 = vmul.f32 0.5, %v678_v51  ;;  %v679_v57 = vadd.f32 %v675_v52, %v306_v53 }
 0x47f   :  { %1584 = vtanh.f32 %v680_v56  ;;  %v681_v5 = vmul.f32 0.5, %v679_v57 }
 0x480   :  { %1586 = vtanh.f32 %v679_v57 }
 0x481   :  { %1588 = vtanh.f32 %v681_v5 }
 0x48c   :  { %v1585_v61 = vpop.eup %1584 }
 0x48d   :  { %v684_v0 = vmul.f32 0.5, %v1585_v61  ;;  %v1587_v3 = vpop.eup %1586 }
 0x48e   :  { %v1589_v6 = vpop.eup %1588 }
 0x48f   :  { %v686_v2 = vadd.f32 0.5, %v684_v0  ;;  %v685_v7 = vmul.f32 0.5, %v1589_v6 }
 0x491   :  { %v690_v4 = vmul.f32 %v1587_v3, %v686_v2  ;;  %v689_v58 = vmul.f32 %v686_v2, %v578_v21  ;;  %v687_v59 = vadd.f32 0.5, %v685_v7 }
 0x493   :  { %692 = vrot.lane.b32.xlu1 %v690_v4, %s1696_s27 }
 0x505   :  { %v693_v17 = vpop.permute.xlu1 %692 }
 0x506   :  { %v695_v20 = vadd.f32 %v693_v17, %v689_v58 }
 0x508   :  { %1590 = vtanh.f32 %v695_v20 }
 0x515   :  { %v1591_v8 = vpop.eup %1590 }
 0x516   :  { %v697_v9 = vmul.f32 %v1591_v8, %v687_v59  ;;  %v320_v8 = vadd.f32 %v2035_v31, %v1936_v1 }
 0x518   :  { %699 = vst.msk [vmem:[#allocation3 + $0x10] sm:$0xff] %vm246_vm2, %v697_v9  ;;  %1481 = vmatmul.mubr.msk.f32.vlgmr.msra.gmra.mxu0 %vm246_vm2, %v697_v9 }
 0x519   :  { %975 = vmatpush1.msra.mxu0 %v1804_v29  ;;  %1022 = vmatprep.mubr.f32.mxu0 %v1699_v45 }
 0x51a   :  { %976 = vmatprep.subr.mxu0 %v1809_v30 }
 0x51b   :  { %977 = vmatpush1.msra.mxu0 %v1816_v32 }
 0x51c   :  { %978 = vmatprep.subr.mxu0 %v1822_v33 }
 0x51d   :  { %979 = vmatpush1.msra.mxu0 %v1829_v35 }
 0x51e   :  { %980 = vmatprep.subr.mxu0 %v1835_v36 }
 0x51f   :  { %981 = vmatpush1.msra.mxu0 %v1841_v38 }
 0x520   :  { %982 = vmatprep.subr.mxu0 %v1847_v39 }
 0x521   :  { %983 = vmatpush1.msra.mxu0 %v1853_v41 }
 0x522   :  { %984 = vmatprep.subr.mxu0 %v1859_v42 }
 0x523   :  { %985 = vmatpush1.msra.mxu0 %v1866_v43 }
 0x524   :  { %986 = vmatprep.subr.mxu0 %v1872_v44 }
 0x525   :  { %987 = vmatpush1.msra.mxu0 %v1879_v46 }
 0x526   :  { %988 = vmatprep.subr.mxu0 %v1885_v47 }
 0x527   :  { %989 = vmatpush1.msra.mxu0 %v1891_v48 }
 0x5d8   :  { %v790_v11 = vpop.f32.mrf.mxu0 }
 0x5d9   :  { %v795_v12 = vadd.f32 %v790_v11, %v308_v10  ;;  %v1564_v11 = vld [vmem:[#allocation6 + $0x18] sm:$0xff]  }
 0x5da   :  { %v792_v13 = vpop.f32.mrf.mxu0 }
 0x5db   :  { %v797_v15 = vmul.f32 0.5, %v795_v12  ;;  %v796_v18 = vadd.f32 %v792_v13, %v310_v14 }
 0x5dd   :  { %1592 = vtanh.f32 %v797_v15  ;;  %v798_v23 = vmul.f32 0.5, %v796_v18 }
 0x5de   :  { %1594 = vtanh.f32 %v796_v18 }
 0x5df   :  { %1596 = vtanh.f32 %v798_v23 }
 0x5ea   :  { %v1593_v54 = vpop.eup %1592 }
 0x5eb   :  { %v801_v19 = vmul.f32 0.5, %v1593_v54  ;;  %v1595_v22 = vpop.eup %1594 }
 0x5ec   :  { %v1597_v50 = vpop.eup %1596 }
 0x5ed   :  { %v803_v21 = vadd.f32 0.5, %v801_v19  ;;  %v802_v16 = vmul.f32 0.5, %v1597_v50 }
 0x5ef   :  { %v807_v55 = vmul.f32 %v1595_v22, %v803_v21  ;;  %v806_v62 = vmul.f32 %v803_v21, %v695_v20  ;;  %v804_v63 = vadd.f32 0.5, %v802_v16  ;;  %v318_v20 = vadd.f32 %v2033_v28, %v1929_v60  ;;  %v1566_v16 = vld [vmem:[#allocation6 + $0x8] sm:$0xff]  }
 0x5f1   :  { %809 = vrot.lane.b32.xlu1 %v807_v55, %s1696_s27  ;;  %v1286_v55 = vld [vmem:[#allocation3 + $0x8] sm:$0xff] }
 0x663   :  { %v810_v24 = vpop.permute.xlu1 %809 }
 0x664   :  { %v812_v25 = vadd.f32 %v810_v24, %v806_v62  ;;  %v1285_v24 = vld [vmem:[#allocation3] sm:$0xff] }
 0x665   :  { %v1293_v50 = vpack.c.bf16 %v1286_v55, %v1285_v24 }
 0x666   :  { %1598 = vtanh.f32 %v812_v25 }
 0x673   :  { %v1599_v51 = vpop.eup %1598 }
 0x674   :  { %v814_v52 = vmul.f32 %v1599_v51, %v804_v63  ;;  %v1567_v63 = vld [vmem:[#allocation6] sm:$0xff]  }
 0x676   :  { %816 = vst.msk [vmem:[#allocation3 + $0x18] sm:$0xff] %vm246_vm2, %v814_v52  ;;  %1482 = vmatmul.mubr.msk.f32.vlgmr.msra.gmra.mxu1 %vm246_vm2, %v814_v52 }
 0x677   :  { %1092 = vmatpush1.msra.mxu1 %v1804_v29  ;;  %1139 = vmatprep.mubr.f32.mxu1 %v1699_v45  ;;  %v314_v29 = vadd.f32 %v2029_v26, %v1929_v60 }
 0x678   :  { %1093 = vmatprep.subr.mxu1 %v1809_v30 }
 0x679   :  { %1094 = vmatpush1.msra.mxu1 %v1816_v32 }
 0x67a   :  { %1095 = vmatprep.subr.mxu1 %v1822_v33 }
 0x67b   :  { %1096 = vmatpush1.msra.mxu1 %v1829_v35  ;;  %v316_v35 = vadd.f32 %v2031_v27, %v1936_v1 }
 0x67c   :  { %1097 = vmatprep.subr.mxu1 %v1835_v36 }
 0x67d   :  { %1098 = vmatpush1.msra.mxu1 %v1841_v38  ;;  %v1288_v51 = vld [vmem:[#allocation3 + $0x18] sm:$0xff] }
 0x67e   :  { %1099 = vmatprep.subr.mxu1 %v1847_v39 }
 0x67f   :  { %1100 = vmatpush1.msra.mxu1 %v1853_v41 }
 0x680   :  { %1101 = vmatprep.subr.mxu1 %v1859_v42 }
 0x681   :  { %1102 = vmatpush1.msra.mxu1 %v1866_v43 }
 0x682   :  { %1103 = vmatprep.subr.mxu1 %v1872_v44 }
 0x683   :  { %1104 = vmatpush1.msra.mxu1 %v1879_v46 }
 0x684   :  { %1105 = vmatprep.subr.mxu1 %v1885_v47 }
 0x685   :  { %1106 = vmatpush1.msra.mxu1 %v1891_v48 }
 0x686   :  { %1518 = vmatprep.subr.bf16.mxu1 %v1564_v11 }
 0x736   :  { %v907_v30 = vpop.f32.mrf.mxu1 }
 0x737   :  { %v912_v32 = vadd.f32 %v907_v30, %v314_v29  ;;  %v1287_v29 = vld [vmem:[#allocation3 + $0x10] sm:$0xff] }
 0x738   :  { %v909_v33 = vpop.f32.mrf.mxu1  ;;  %v1294_v30 = vpack.c.bf16 %v1288_v51, %v1287_v29 }
 0x739   :  { %v914_v36 = vmul.f32 0.5, %v912_v32  ;;  %v913_v38 = vadd.f32 %v909_v33, %v316_v35  ;;  %v324_v35 = vadd.f32 %v2037_v34, %v1929_v60  ;;  %v1187_v34 = vld [vmem:[%s2209_s6 + $0x70] sm:$0xff] }
 0x73b   :  { %1600 = vtanh.f32 %v914_v36  ;;  %v915_v0 = vmul.f32 0.5, %v913_v38 }
 0x73c   :  { %1602 = vtanh.f32 %v913_v38 }
 0x73d   :  { %1604 = vtanh.f32 %v915_v0  ;;  %v1188_v0 = vld [vmem:[%s2209_s6 + $0x78] sm:$0xff] }
 0x73e   :  { %1208 = vmatprep.subr.mxu0 %v1188_v0 }
 0x748   :  { %v1601_v39 = vpop.eup %1600 }
 0x749   :  { %v918_v53 = vmul.f32 0.5, %v1601_v39  ;;  %v1603_v57 = vpop.eup %1602 }
 0x74a   :  { %v1605_v4 = vpop.eup %1604 }
 0x74b   :  { %v920_v56 = vadd.f32 0.5, %v918_v53  ;;  %v919_v5 = vmul.f32 0.5, %v1605_v4  ;;  %v326_v53 = vadd.f32 %v2039_v37, %v1936_v1  ;;  %v1186_v37 = vld [vmem:[%s2209_s6 + $0x68] sm:$0xff] }
 0x74d   :  { %v924_v61 = vmul.f32 %v1603_v57, %v920_v56  ;;  %v923_v26 = vmul.f32 %v920_v56, %v812_v25  ;;  %v921_v27 = vadd.f32 0.5, %v919_v5  ;;  %v1565_v25 = vld [vmem:[#allocation6 + $0x10] sm:$0xff]  }
 0x74e   :  { %v1183_v5 = vld [vmem:[%s2209_s6 + $0x50] sm:$0xff] }
 0x74f   :  { %926 = vrot.lane.b32.xlu0 %v924_v61, %s1696_s27  ;;  %v2119_v61 = vld [vmem:[%s2212_s9] ss:$0 sm:$0xff] }
 0x7c1   :  { %v927_v2 = vpop.permute.xlu0 %926 }
 0x7c2   :  { %v929_v3 = vadd.f32 %v927_v2, %v923_v26  ;;  %v1185_v26 = vld [vmem:[%s2209_s6 + $0x60] sm:$0xff] }
 0x7c4   :  { %1606 = vtanh.f32 %v929_v3 }
 0x7d1   :  { %v1607_v58 = vpop.eup %1606 }
 0x7d2   :  { %v931_v17 = vmul.f32 %v1607_v58, %v921_v27 }
 0x7d4   :  { %933 = vst.msk [vmem:[#allocation3 + $0x20] sm:$0xff] %vm246_vm2, %v931_v17  ;;  %1483 = vmatmul.mubr.msk.f32.vlgmr.msra.gmra.mxu0 %vm246_vm2, %v931_v17  ;;  %v1182_v17 = vld [vmem:[%s2209_s6 + $0x48] sm:$0xff] }
 0x7d5   :  { %1256 = vmatprep.mubr.f32.mxu0 %v1699_v45  ;;  %1209 = vmatpush1.msra.mxu0 %v1187_v34 }
 0x7d6   :  { %1210 = vmatprep.subr.mxu0 %v1186_v37 }
 0x7d7   :  { %1211 = vmatpush1.msra.mxu0 %v1185_v26 }
 0x7db   :  { %v1289_v32 = vld [vmem:[#allocation3 + $0x20] sm:$0xff] }
 0x894   :  { %v1024_v6 = vpop.f32.mrf.mxu0 }
 0x895   :  { %v1029_v7 = vadd.f32 %v1024_v6, %v318_v20 }
 0x896   :  { %v1026_v59 = vpop.f32.mrf.mxu0 }
 0x897   :  { %v1031_v9 = vmul.f32 0.5, %v1029_v7  ;;  %v1030_v10 = vadd.f32 %v1026_v59, %v320_v8  ;;  %v1181_v7 = vld [vmem:[%s2209_s6 + $0x40] sm:$0xff]  ;;  %v1180_v8 = vld [vmem:[%s2209_s6 + $0x38] sm:$0xff] }
 0x899   :  { %1608 = vtanh.f32 %v1031_v9  ;;  %v1032_v28 = vmul.f32 0.5, %v1030_v10 }
 0x89a   :  { %1610 = vtanh.f32 %v1030_v10 }
 0x89b   :  { %1612 = vtanh.f32 %v1032_v28 }
 0x8a6   :  { %v1609_v12 = vpop.eup %1608 }
 0x8a7   :  { %v1035_v13 = vmul.f32 0.5, %v1609_v12  ;;  %v1611_v15 = vpop.eup %1610 }
 0x8a8   :  { %v1613_v31 = vpop.eup %1612 }
 0x8a9   :  { %v1037_v14 = vadd.f32 0.5, %v1035_v13  ;;  %v1036_v21 = vmul.f32 0.5, %v1613_v31 }
 0x8ab   :  { %v1041_v45 = vmul.f32 %v1611_v15, %v1037_v14  ;;  %v1040_v18 = vmul.f32 %v1037_v14, %v929_v3  ;;  %v1038_v22 = vadd.f32 0.5, %v1036_v21  ;;  %v1184_v3 = vld [vmem:[%s2209_s6 + $0x58] sm:$0xff] }
 0x8ac   :  { %1212 = vmatprep.subr.mxu0 %v1184_v3 }
 0x8ad   :  { %1043 = vrot.lane.b32.xlu1 %v1041_v45, %s1696_s27  ;;  %1213 = vmatpush1.msra.mxu0 %v1183_v5 }
 0x8ae   :  { %1214 = vmatprep.subr.mxu0 %v1182_v17 }
 0x8af   :  { %1215 = vmatpush1.msra.mxu0 %v1181_v7 }
 0x8b0   :  { %1216 = vmatprep.subr.mxu0 %v1180_v8 }
 0x8b1   :  { %1217 = vmatpush1.msra.mxu0 %v1853_v41 }
 0x8b2   :  { %1218 = vmatprep.subr.mxu0 %v1859_v42 }
 0x8b3   :  { %1219 = vmatpush1.msra.mxu0 %v1866_v43 }
 0x8b4   :  { %1220 = vmatprep.subr.mxu0 %v1872_v44 }
 0x8b5   :  { %1221 = vmatpush1.msra.mxu0 %v1879_v46 }
 0x8b6   :  { %1222 = vmatprep.subr.mxu0 %v1885_v47 }
 0x8b7   :  { %1223 = vmatpush1.msra.mxu0 %v1891_v48 }
 0x91f   :  { %v1044_v54 = vpop.permute.xlu1 %1043 }
 0x920   :  { %v2104_v19 = vadd.f32 %v1044_v54, %v1040_v18 }
 0x922   :  { %1614 = vtanh.f32 %v2104_v19 }
 0x92f   :  { %v1615_v23 = vpop.eup %1614 }
 0x930   :  { %v1048_v62 = vmul.f32 %v1615_v23, %v1038_v22 }
 0x932   :  { %1050 = vst.msk [vmem:[#allocation3 + $0x28] sm:$0xff] %vm246_vm2, %v1048_v62  ;;  %1484 = vmatmul.mubr.msk.f32.vlgmr.msra.gmra.mxu1 %vm246_vm2, %v1048_v62  ;;  %v328_v62 = vadd.f32 %v2041_v40, %v1929_v60 }
 0x933   :  { %1519 = vmatpush3.bf16.msra.mxu1 %v1564_v11  ;;  %1526 = vmatprep.mubr.msk.bf16.mxu1 %vm246_vm2, %v1293_v50 }
 0x934   :  { %1520 = vmatprep.subr.bf16.mxu1 %v1565_v25 }
 0x937   :  { %1521 = vmatpush3.bf16.msra.mxu1 %v1565_v25 }
 0x938   :  { %1522 = vmatprep.subr.bf16.mxu1 %v1566_v16 }
 0x939   :  { %v1290_v52 = vld [vmem:[#allocation3 + $0x28] sm:$0xff] }
 0x93a   :  { %v1295_v33 = vpack.c.bf16 %v1290_v52, %v1289_v32 }
 0x93b   :  { %1523 = vmatpush3.bf16.msra.mxu1 %v1566_v16 }
 0x93c   :  { %1524 = vmatprep.subr.bf16.mxu1 %v1567_v63 }
 0x93f   :  { %1525 = vmatpush3.bf16.msra.mxu1 %v1567_v63 }
 0x942   :  { %1527 = vmatmul.mubr.msk.bf16.vlgmr.msra.gmra.mxu1 %vm246_vm2, %v1294_v30 }
 0x943   :  { %1530 = vmatprep.mubr.msk.bf16.mxu1 %vm246_vm2, %v1295_v33 }
 0x9f2   :  { %v1141_v36 = vpop.f32.mrf.mxu1 }
 0x9f3   :  { %v1146_v38 = vadd.f32 %v1141_v36, %v324_v35 }
 0x9f4   :  { %v1143_v39 = vpop.f32.mrf.mxu1 }
 0x9f5   :  { %v1148_v56 = vmul.f32 0.5, %v1146_v38  ;;  %v1147_v57 = vadd.f32 %v1143_v39, %v326_v53 }
 0x9f7   :  { %1616 = vtanh.f32 %v1148_v56  ;;  %v1149_v46 = vmul.f32 0.5, %v1147_v57 }
 0x9f8   :  { %1618 = vtanh.f32 %v1147_v57 }
 0xa02   :  { %v1528_v2 = vpop.f32.mrf.mxu1 }
 0xa03   :  { %v1391_v4 = vadd.f32 %v1528_v2, %v2119_v61 }
 0xa04   :  { %v1617_v27 = vpop.eup %1616  ;;  %v1382_v58 = vpop.f32.mrf.mxu1 }
 0xa05   :  { %1620 = vtanh.f32 %v1391_v4  ;;  %v1383_v20 = vadd.f32 %v2119_v61, %v1382_v58  ;;  %v1152_v6 = vmul.f32 0.5, %v1617_v27  ;;  %v1619_v11 = vpop.eup %1618 }
 0xa06   :  { %v1529_v59 = vpop.f32.mrf.mxu1 }
 0xa07   :  { %1622 = vtanh.f32 %v1383_v20  ;;  %v1394_v9 = vadd.f32 %v1529_v59, %v2119_v61  ;;  %v1154_v10 = vadd.f32 0.5, %v1152_v6 }
 0xa08   :  { %v1385_v12 = vpop.f32.mrf.mxu1 }
 0xa09   :  { %1624 = vtanh.f32 %v1394_v9  ;;  %v1386_v13 = vadd.f32 %v2119_v61, %v1385_v12  ;;  %v1158_v14 = vmul.f32 %v1619_v11, %v1154_v10  ;;  %v1157_v47 = vmul.f32 %v1154_v10, %v2104_v19 }
 0xa0a   :  { %v330_v19 = vadd.f32 %v2043_v49, %v1936_v1 }
 0xa0b   :  { %1626 = vtanh.f32 %v1386_v13  ;;  %1160 = vrot.lane.b32.xlu0 %v1158_v14, %s1696_s27 }
 0xa0c   :  { %1628 = vtanh.f32 %v1149_v46 }
 0xa12   :  { %v1621_v15 = vpop.eup %1620 }
 0xa13   :  { %v1423_v45 = vmul.f32 2.0, %v1621_v15 }
 0xa14   :  { %v1623_v28 = vpop.eup %1622 }
 0xa15   :  { %1431 = vst [vmem:[%s2213_s10 + $0x10] sm:$0xff] %v1423_v45  ;;  %v1421_v41 = vmul.f32 2.0, %v1623_v28 }
 0xa16   :  { %v1625_v18 = vpop.eup %1624 }
 0xa17   :  { %1429 = vst [vmem:[%s2213_s10] sm:$0xff] %v1421_v41  ;;  %v1424_v42 = vmul.f32 2.0, %v1625_v18 }
 0xa18   :  { %v1627_v43 = vpop.eup %1626 }
 0xa19   :  { %1432 = vst [vmem:[%s2213_s10 + $0x18] sm:$0xff] %v1424_v42  ;;  %v1422_v44 = vmul.f32 2.0, %v1627_v43  ;;  %v1629_v31 = vpop.eup %1628 }
 0xa1a   :  { %v1153_v21 = vmul.f32 0.5, %v1629_v31 }
 0xa1b   :  { %1430 = vst [vmem:[%s2213_s10 + $0x8] sm:$0xff] %v1422_v44 }
 0xa1c   :  { %v1155_v22 = vadd.f32 0.5, %v1153_v21 }
 0xa7d   :  { %v1161_v48 = vpop.permute.xlu0 %1160 }
 0xa7e   :  { %v1163_v54 = vadd.f32 %v1161_v48, %v1157_v47 }
 0xa80   :  { %1630 = vtanh.f32 %v1163_v54 }
 0xa8d   :  { %v1631_v55 = vpop.eup %1630 }
 0xa8e   :  { %v1165_v23 = vmul.f32 %v1631_v55, %v1155_v22 }
 0xa90   :  { %1167 = vst.msk [vmem:[#allocation3 + $0x30] sm:$0xff] %vm246_vm2, %v1165_v23  ;;  %1485 = vmatmul.mubr.msk.f32.vlgmr.msra.gmra.mxu0 %vm246_vm2, %v1165_v23 }
 0xa97   :  { %v1291_v53 = vld [vmem:[#allocation3 + $0x30] sm:$0xff] }
 0xb50   :  { %v1258_v24 = vpop.f32.mrf.mxu0 }
 0xb51   :  { %v1263_v25 = vadd.f32 %v1258_v24, %v328_v62 }
 0xb52   :  { %v1260_v50 = vpop.f32.mrf.mxu0 }
 0xb53   :  { %v1265_v16 = vmul.f32 0.5, %v1263_v25  ;;  %v1264_v63 = vadd.f32 %v1260_v50, %v330_v19 }
 0xb55   :  { %1632 = vtanh.f32 %v1265_v16  ;;  %v1266_v33 = vmul.f32 0.5, %v1264_v63 }
 0xb56   :  { %1634 = vtanh.f32 %v1264_v63 }
 0xb57   :  { %1636 = vtanh.f32 %v1266_v33 }
 0xb62   :  { %v1633_v51 = vpop.eup %1632 }
 0xb63   :  { %v1269_v52 = vmul.f32 0.5, %v1633_v51  ;;  %v1635_v30 = vpop.eup %1634 }
 0xb64   :  { %v1637_v1 = vpop.eup %1636 }
 0xb65   :  { %v1271_v29 = vadd.f32 0.5, %v1269_v52  ;;  %v1270_v49 = vmul.f32 0.5, %v1637_v1 }
 0xb67   :  { %v1275_v32 = vmul.f32 %v1635_v30, %v1271_v29  ;;  %v1274_v60 = vmul.f32 %v1271_v29, %v1163_v54  ;;  %v1272_v36 = vadd.f32 0.5, %v1270_v49 }
 0xb69   :  { %1277 = vrot.lane.b32.xlu1 %v1275_v32, %s1696_s27 }
 0xbdb   :  { %v1278_v40 = vpop.permute.xlu1 %1277 }
 0xbdc   :  { %v1280_v35 = vadd.f32 %v1278_v40, %v1274_v60 }
 0xbde   :  { %1638 = vtanh.f32 %v1280_v35  ;;  %1438 = vrot.lane.b32.xlu0 %v1280_v35, %s1696_s27 }
 0xbeb   :  { %v1639_v38 = vpop.eup %1638 }
 0xbec   :  { %v1282_v39 = vmul.f32 %v1639_v38, %v1272_v36 }
 0xbee   :  { %1284 = vst.msk [vmem:[#allocation3 + $0x38] sm:$0xff] %vm246_vm2, %v1282_v39 }
 0xbf5   :  { %v1292_v56 = vld [vmem:[#allocation3 + $0x38] sm:$0xff] }
 0xbf6   :  { %v1296_v57 = vpack.c.bf16 %v1292_v56, %v1291_v53 }
 0xbf8   :  { %1531 = vmatmul.mubr.msk.bf16.gmra.mxu1 %vm246_vm2, %v1296_v57 }
 0xc50   :  { %v1439_v0 = vpop.permute.xlu0 %1438 }
 0xc51   :  { %v1441_v34 = vsel %vm246_vm2, %v1282_v39, %v1439_v0 }
 0xc52   :  { %1442 = vst [vmem:[%s2214_s11] sm:$0xff] %v1441_v34 }
 0xcb8   :  { %v1532_v37 = vpop.f32.mrf.mxu1 }
 0xcb9   :  { %v1407_v26 = vadd.f32 %v1532_v37, %v2119_v61 }
 0xcba   :  { %v1398_v2 = vpop.f32.mrf.mxu1 }
 0xcbb   :  { %1640 = vtanh.f32 %v1407_v26  ;;  %v1399_v3 = vadd.f32 %v2119_v61, %v1398_v2 }
 0xcbc   :  { %v1533_v4 = vpop.f32.mrf.mxu1 }
 0xcbd   :  { %1642 = vtanh.f32 %v1399_v3  ;;  %v1410_v5 = vadd.f32 %v1533_v4, %v2119_v61 }
 0xcbe   :  { %v1401_v27 = vpop.f32.mrf.mxu1 }
 0xcbf   :  { %1644 = vtanh.f32 %v1410_v5  ;;  %v1402_v58 = vadd.f32 %v2119_v61, %v1401_v27 }
 0xcc1   :  { %1646 = vtanh.f32 %v1402_v58 }
 0xcc8   :  { %v1641_v17 = vpop.eup %1640 }
 0xcc9   :  { %v1427_v20 = vmul.f32 2.0, %v1641_v17 }
 0xcca   :  { %v1643_v6 = vpop.eup %1642 }
 0xccb   :  { %1435 = vst [vmem:[%s2213_s10 + $0x30] sm:$0xff] %v1427_v20  ;;  %v1425_v7 = vmul.f32 2.0, %v1643_v6 }
 0xccc   :  { %v1645_v59 = vpop.eup %1644 }
 0xccd   :  { %1433 = vst [vmem:[%s2213_s10 + $0x20] sm:$0xff] %v1425_v7  ;;  %v1428_v8 = vmul.f32 2.0, %v1645_v59 }
 0xcce   :  { %v1647_v9 = vpop.eup %1646 }
 0xccf   :  { %1436 = vst [vmem:[%s2213_s10 + $0x38] sm:$0xff] %v1428_v8  ;;  %v1426_v61 = vmul.f32 2.0, %v1647_v9 }
 0xcd1   :  { %1434 = vst [vmem:[%s2213_s10 + $0x28] sm:$0xff] %v1426_v61 }
 0xcd2   :  { %1451 = vsyncpa [#allocation5], 1 }
 0xcd3   :  { %1452 = vsyncpa [#allocation7], 1 }

</bundles_post_ra>
